<compile_context>
chip_gen: v7x
topology: tpu7x:2x2x1
jax: 0.10.0
libtpu: 0.0.40
codegen_flags: <defaults>
</compile_context>

<pallas_src>
import functools

import jax
import jax.numpy as jnp
from jax import lax
from jax.experimental import pallas as pl
from jax.experimental.pallas import tpu as pltpu


DROPOUT_P = 0.2
_KEEP_P = 1.0 - DROPOUT_P


# ----------------------------------------------------------------------------
# Wrapper-side im2col helpers (plain JAX glue; the conv compute stays in Pallas).
# ----------------------------------------------------------------------------
def _im2col_3x3x3(x):
    # x: (N, D, H, W, C) -> (N, D, H, W, 27*C); taps ordered (kd, kh, kw), channel-minor,
    # matching w.reshape(27*Cin, Cout).
    n, d, h, w, c = x.shape
    xp = jnp.pad(x, ((0, 0), (1, 1), (1, 1), (1, 1), (0, 0)))
    cols = [xp[:, kd:kd + d, kh:kh + h, kw:kw + w, :]
            for kd in range(3) for kh in range(3) for kw in range(3)]
    return jnp.concatenate(cols, axis=-1)


def _group_pool_windows(p):
    # p: (N, D, H, W, K) -> (N, 8, Do*Ho*Wo, K), grouped by 2x2x2 pool-window position
    # so the fused conv1 kernel can max-reduce over the leading "8" axis.
    n, d, h, w, k = p.shape
    do, ho, wo = d // 2, h // 2, w // 2
    p = p.reshape(n, do, 2, ho, 2, wo, 2, k)
    p = p.transpose(0, 2, 4, 6, 1, 3, 5, 7)          # (N, 2,2,2, Do, Ho, Wo, K)
    return p.reshape(n, 8, do * ho * wo, k)


# ----------------------------------------------------------------------------
# Kernel 1: conv1 (im2col matmul, K = 27*Cin) + bias + ReLU + fused 2x2x2 max-pool.
# One batch element per grid step; 8 dots (one per pool-window position) with a
# running elementwise max -> no separate pooling pass, no strided ref indexing.
# ----------------------------------------------------------------------------
def _conv1_relu_pool_kernel(p_ref, w_ref, b_ref, o_ref):
    # p_ref: (1, 8, Ro, K1) bf16   (Ro = Do*Ho*Wo)
    # w_ref: (K1, C1) bf16 ; b_ref: (1, C1) f32 ; o_ref: (1, Ro, C1) bf16
    w = w_ref[...]
    b = b_ref[...]
    pooled = None
    for j in range(p_ref.shape[1]):                      # 8 window positions, static
        v = jnp.dot(p_ref[0, j], w, preferred_element_type=jnp.float32) + b
        v = jnp.maximum(v, 0.0)                          # ReLU before pool (as in torch)
        pooled = v if pooled is None else jnp.maximum(pooled, v)
    o_ref[0] = pooled.astype(o_ref.dtype)


def conv1_relu_pool(patches, wmat, b):
    # patches: (N, 8, Ro, K1) bf16; wmat: (K1, C1) bf16; b: (1, C1) f32
    n, p8, ro, k = patches.shape
    c1 = wmat.shape[1]
    return pl.pallas_call(
        _conv1_relu_pool_kernel,
        out_shape=jax.ShapeDtypeStruct((n, ro, c1), jnp.bfloat16),
        grid=(n,),
        in_specs=[
            pl.BlockSpec((1, p8, ro, k), lambda i: (i, 0, 0, 0)),
            pl.BlockSpec((k, c1), lambda i: (0, 0)),
            pl.BlockSpec((1, c1), lambda i: (0, 0)),
        ],
        out_specs=pl.BlockSpec((1, ro, c1), lambda i: (i, 0, 0)),
        compiler_params=pltpu.CompilerParams(dimension_semantics=("parallel",)),
    )(patches, wmat, b)


# ----------------------------------------------------------------------------
# Kernel 2: conv2 (im2col matmul, K = 27*32 = 864) + bias + ReLU.
# ----------------------------------------------------------------------------
def _conv2_relu_kernel(p_ref, w_ref, b_ref, o_ref):
    # p_ref: (1, R, K2) bf16 ; w_ref: (K2, C2) bf16 ; b_ref: (1, C2) f32 ; o_ref: (1, R, C2)
    out = jnp.dot(p_ref[0], w_ref[...], preferred_element_type=jnp.float32) + b_ref[...]
    o_ref[0] = jnp.maximum(out, 0.0).astype(o_ref.dtype)


def conv2_relu(patches, wmat, b):
    n, r, k = patches.shape
    c2 = wmat.shape[1]
    return pl.pallas_call(
        _conv2_relu_kernel,
        out_shape=jax.ShapeDtypeStruct((n, r, c2), jnp.bfloat16),
        grid=(n,),
        in_specs=[
            pl.BlockSpec((1, r, k), lambda i: (i, 0, 0)),
            pl.BlockSpec((k, c2), lambda i: (0, 0)),
            pl.BlockSpec((1, c2), lambda i: (0, 0)),
        ],
        out_specs=pl.BlockSpec((1, r, c2), lambda i: (i, 0, 0)),
        compiler_params=pltpu.CompilerParams(dimension_semantics=("parallel",)),
    )(patches, wmat, b)


# ----------------------------------------------------------------------------
# Kernel 3: fused head  dropout(0.2) -> fc1 -> ReLU -> fc2 -> cross-entropy(mean).
# The F contraction is split over the grid ("arbitrary") with a VMEM f32 accumulator
# so the fc1 weight DMA is pipelined against the dropout + matmul work.
# ----------------------------------------------------------------------------
def _head_kernel(x_ref, u_ref, w1_ref, b1_ref, w2_ref, b2_ref, y_ref,
                 logits_ref, loss_ref, h_acc):
    j = pl.program_id(0)

    @pl.when(j == 0)
    def _init():
        h_acc[...] = jnp.zeros_like(h_acc)

    # Dropout (train mode): keep w.p. 0.8, scale kept values by 1/0.8.
    keep = u_ref[...] < _KEEP_P
    x = jnp.where(keep, x_ref[...].astype(jnp.float32) * (1.0 / _KEEP_P), 0.0)
    h_acc[...] += jnp.dot(x.astype(jnp.bfloat16), w1_ref[...],
                          preferred_element_type=jnp.float32)

    @pl.when(j == pl.num_programs(0) - 1)
    def _finalize():
        h = jnp.maximum(h_acc[...] + b1_ref[...], 0.0)
        logits = jnp.dot(h, w2_ref[...], preferred_element_type=jnp.float32) + b2_ref[...]
        logits_ref[...] = logits
        # CrossEntropyLoss(mean): loss_i = logsumexp(logits_i) - logits_i[y_i]
        m = jnp.max(logits, axis=-1, keepdims=True)
        lse = jnp.log(jnp.sum(jnp.exp(logits - m), axis=-1, keepdims=True)) + m
        cls = lax.broadcasted_iota(jnp.int32, logits.shape, 1)
        picked = jnp.sum(jnp.where(cls == y_ref[...], logits, 0.0),
                         axis=-1, keepdims=True)
        loss_ref[...] = jnp.mean(lse - picked, axis=0, keepdims=True)


def mlp_head_with_loss(feats, u, w1, b1, w2, b2, y, chunk=1024):
    n, f = feats.shape
    hd = w1.shape[1]
    k = w2.shape[1]
    ft = chunk if (f % chunk == 0) else f
    steps = f // ft
    y2 = y.astype(jnp.int32).reshape(n, 1)
    logits, loss = pl.pallas_call(
        _head_kernel,
        out_shape=(jax.ShapeDtypeStruct((n, k), jnp.float32),
                   jax.ShapeDtypeStruct((1, 1), jnp.float32)),
        grid=(steps,),
        in_specs=[
            pl.BlockSpec((n, ft), lambda j: (0, j)),      # features (bf16)
            pl.BlockSpec((n, ft), lambda j: (0, j)),      # dropout uniforms (f32)
            pl.BlockSpec((ft, hd), lambda j: (j, 0)),     # fc1 weight chunk (bf16)
            pl.BlockSpec((1, hd), lambda j: (0, 0)),
            pl.BlockSpec((hd, k), lambda j: (0, 0)),
            pl.BlockSpec((1, k), lambda j: (0, 0)),
            pl.BlockSpec((n, 1), lambda j: (0, 0)),
        ],
        out_specs=(pl.BlockSpec((n, k), lambda j: (0, 0)),
                   pl.BlockSpec((1, 1), lambda j: (0, 0))),
        scratch_shapes=[pltpu.VMEM((n, hd), jnp.float32)],
        compiler_params=pltpu.CompilerParams(dimension_semantics=("arbitrary",)),
    )(feats, u, w1, b1, w2, b2, y2)
    return logits, loss


# ----------------------------------------------------------------------------
# Parameter prep (done once, outside the jitted forward).
# ----------------------------------------------------------------------------
def fold_fc1_rows_to_ndhwc(fc1_w, c, d, h, w):
    # fc1_w rows are in PyTorch x.view(-1, C*D*H*W) order (c,d,h,w); permute them to the
    # (d,h,w,c) order of our NDHWC-flattened features.  Mathematically identical matmul.
    feat, hid = fc1_w.shape
    assert feat == c * d * h * w
    return fc1_w.reshape(c, d, h, w, hid).transpose(1, 2, 3, 0, 4).reshape(feat, hid)


def prepare_params(params, pooled_dims):
    do, ho, wo = pooled_dims
    c1 = params["conv1_w"].shape[-1]
    c2 = params["conv2_w"].shape[-1]
    return {
        "w1m": params["conv1_w"].reshape(-1, c1).astype(jnp.bfloat16),   # (27*Cin, 32)
        "b1": params["conv1_b"].reshape(1, c1).astype(jnp.float32),
        "w2m": params["conv2_w"].reshape(-1, c2).astype(jnp.bfloat16),   # (27*32, 64)
        "b2": params["conv2_b"].reshape(1, c2).astype(jnp.float32),
        "fc1_w": fold_fc1_rows_to_ndhwc(params["fc1_w"], c2, do, ho, wo
                                        ).astype(jnp.bfloat16),
        "fc1_b": params["fc1_b"].reshape(1, -1).astype(jnp.float32),
        "fc2_w": params["fc2_w"].astype(jnp.float32),
        "fc2_b": params["fc2_b"].reshape(1, -1).astype(jnp.float32),
    }


# ----------------------------------------------------------------------------
# Full forward pass.
# ----------------------------------------------------------------------------
def baseline_3dconvnet_forward(kp, x_ncdhw, y, dropout_key):
    x = jnp.transpose(x_ncdhw.astype(jnp.float32), (0, 2, 3, 4, 1))   # NCDHW -> NDHWC
    n, d, h, w, _ = x.shape
    assert d % 2 == 0 and h % 2 == 0 and w % 2 == 0
    do, ho, wo = d // 2, h // 2, w // 2
    c1 = kp["b1"].shape[-1]
    c2 = kp["b2"].shape[-1]

    # conv1 + relu + maxpool(2,2,2), fused.  K = 27*Cin.
    p1 = _group_pool_windows(_im2col_3x3x3(x)).astype(jnp.bfloat16)   # (N, 8, Ro, 27*Cin)
    a1 = conv1_relu_pool(p1, kp["w1m"], kp["b1"])                     # (N, Ro, 32) bf16
    a1 = a1.reshape(n, do, ho, wo, c1)

    # conv2 + relu.  K = 27*32.
    p2 = _im2col_3x3x3(a1).reshape(n, do * ho * wo, 27 * c1)          # (N, Ro, 864) bf16
    a2 = conv2_relu(p2, kp["w2m"], kp["b2"])                          # (N, Ro, 64) bf16

    # Flatten in NDHWC order; the (C,D,H,W) permutation is pre-folded into fc1 rows.
    feats = a2.reshape(n, do * ho * wo * c2)

    # Dropout mask uniforms (train mode).
    # TODO(synk): switch to in-kernel pltpu.prng_seed/prng_random_bits once the sandbox
    # interpreter supports the TPU PRNG primitives; kept in plain JAX for portability.
    u = jax.random.uniform(dropout_key, feats.shape, jnp.float32)

    logits, loss = mlp_head_with_loss(feats, u, kp["fc1_w"], kp["fc1_b"],
                                      kp["fc2_w"], kp["fc2_b"], y)
    return logits, loss[0, 0]


def init_params(key, in_channels, num_classes, feat_dim):
    ks = jax.random.split(key, 8)
    return {
        "conv1_w": jax.random.normal(ks[0], (3, 3, 3, in_channels, 32), jnp.float32) * 0.10,
        "conv1_b": jax.random.normal(ks[1], (32,), jnp.float32) * 0.01,
        "conv2_w": jax.random.normal(ks[2], (3, 3, 3, 32, 64), jnp.float32) * 0.05,
        "conv2_b": jax.random.normal(ks[3], (64,), jnp.float32) * 0.01,
        "fc1_w":   jax.random.normal(ks[4], (feat_dim, 128), jnp.float32) * 0.02,
        "fc1_b":   jax.random.normal(ks[5], (128,), jnp.float32) * 0.01,
        "fc2_w":   jax.random.normal(ks[6], (128, num_classes), jnp.float32) * 0.10,
        "fc2_b":   jax.random.normal(ks[7], (num_classes,), jnp.float32) * 0.01,
    }


if __name__ == "__main__":
    # Small shapes consistent with the module (fc1 in_features = 64 * (D/2) * (H/2) * (W/2)).
    N, C_in, D, H, W = 2, 4, 2, 16, 16
    num_classes = 10
    Do, Ho, Wo = D // 2, H // 2, W // 2
    feat_dim = 64 * Do * Ho * Wo   # = 4096

    key = jax.random.PRNGKey(0)
    kx, ky, kp, kdrop = jax.random.split(key, 4)
    x = jax.random.normal(kx, (N, C_in, D, H, W), jnp.float32)        # PyTorch NCDHW input
    y = jax.random.randint(ky, (N,), 0, num_classes, jnp.int32)
    params = init_params(kp, C_in, num_classes, feat_dim)
    kparams = prepare_params(params, (Do, Ho, Wo))                    # one-time prep (off the jit path)

    fwd = jax.jit(functools.partial(baseline_3dconvnet_forward, kparams))
    logits, loss = fwd(x, y, kdrop)
    jax.block_until_ready((logits, loss))

    assert logits.shape == (N, num_classes)
    assert bool(jnp.isfinite(loss)) and bool(jnp.all(jnp.isfinite(logits)))
    print("KERNEL_OK")
</pallas_src>

<mosaic_0001>
module attributes {stable_mosaic.version = 11 : i64} {
  func.func @_conv1_relu_pool_kernel(%arg0: i32, %arg1: memref<1x8x64x108xbf16, #tpu.memory_space<vmem>>, %arg2: memref<108x32xbf16, #tpu.memory_space<vmem>>, %arg3: memref<1x32xf32, #tpu.memory_space<vmem>>, %arg4: memref<1x64x32xbf16, #tpu.memory_space<vmem>>) attributes {dimension_semantics = [#tpu.dimension_semantics<parallel>], iteration_bounds = array<i64: 2>, scalar_prefetch = 0 : i64, scratch_operands = 0 : i64, tpu.core_type = #tpu.core_type<tc>, window_params = [{transform_indices = @transform_0, window_bounds = array<i64: 1, 8, 64, 108>}, {pipeline_mode = #tpu.pipeline_mode<synchronous>, transform_indices = @transform_1, window_bounds = array<i64: 108, 32>}, {pipeline_mode = #tpu.pipeline_mode<synchronous>, transform_indices = @transform_2, window_bounds = array<i64: 1, 32>}, {transform_indices = @transform_3, window_bounds = array<i64: 1, 64, 32>}]} {
    %c0 = arith.constant 0 : index
    %c0_0 = arith.constant 0 : index
    %0 = vector.load %arg2[%c0, %c0_0] : memref<108x32xbf16, #tpu.memory_space<vmem>>, vector<108x32xbf16>
    %c0_1 = arith.constant 0 : index
    %c0_2 = arith.constant 0 : index
    %1 = vector.load %arg3[%c0_1, %c0_2] : memref<1x32xf32, #tpu.memory_space<vmem>>, vector<1x32xf32>
    %c0_3 = arith.constant 0 : index
    %c0_4 = arith.constant 0 : index
    %c0_5 = arith.constant 0 : index
    %c0_6 = arith.constant 0 : index
    %2 = vector.load %arg1[%c0_3, %c0_4, %c0_5, %c0_6] : memref<1x8x64x108xbf16, #tpu.memory_space<vmem>>, vector<1x1x64x108xbf16>
    %3 = vector.shape_cast %2 : vector<1x1x64x108xbf16> to vector<64x108xbf16>
    %cst = arith.constant dense<0.000000e+00> : vector<64x32xf32>
    %4 = tpu.matmul %3, %0, %cst {dimension_numbers = #tpu.dot_dimension_numbers<[1], [0], [0], [1], [0, 0, 1, 1], [], []>} : vector<64x108xbf16>, vector<108x32xbf16>, vector<64x32xf32> -> vector<64x32xf32>
    %5 = vector.broadcast %1 : vector<1x32xf32> to vector<64x32xf32>
    %6 = arith.addf %4, %5 : vector<64x32xf32>
    %cst_7 = arith.constant 0.000000e+00 : f32
    %7 = vector.broadcast %cst_7 : f32 to vector<64x32xf32>
    %8 = arith.maximumf %6, %7 : vector<64x32xf32>
    %c0_8 = arith.constant 0 : index
    %c1 = arith.constant 1 : index
    %c0_9 = arith.constant 0 : index
    %c0_10 = arith.constant 0 : index
    %9 = vector.load %arg1[%c0_8, %c1, %c0_9, %c0_10] : memref<1x8x64x108xbf16, #tpu.memory_space<vmem>>, vector<1x1x64x108xbf16>
    %10 = vector.shape_cast %9 : vector<1x1x64x108xbf16> to vector<64x108xbf16>
    %cst_11 = arith.constant dense<0.000000e+00> : vector<64x32xf32>
    %11 = tpu.matmul %10, %0, %cst_11 {dimension_numbers = #tpu.dot_dimension_numbers<[1], [0], [0], [1], [0, 0, 1, 1], [], []>} : vector<64x108xbf16>, vector<108x32xbf16>, vector<64x32xf32> -> vector<64x32xf32>
    %12 = vector.broadcast %1 : vector<1x32xf32> to vector<64x32xf32>
    %13 = arith.addf %11, %12 : vector<64x32xf32>
    %cst_12 = arith.constant 0.000000e+00 : f32
    %14 = vector.broadcast %cst_12 : f32 to vector<64x32xf32>
    %15 = arith.maximumf %13, %14 : vector<64x32xf32>
    %16 = arith.maximumf %8, %15 : vector<64x32xf32>
    %c0_13 = arith.constant 0 : index
    %c2 = arith.constant 2 : index
    %c0_14 = arith.constant 0 : index
    %c0_15 = arith.constant 0 : index
    %17 = vector.load %arg1[%c0_13, %c2, %c0_14, %c0_15] : memref<1x8x64x108xbf16, #tpu.memory_space<vmem>>, vector<1x1x64x108xbf16>
    %18 = vector.shape_cast %17 : vector<1x1x64x108xbf16> to vector<64x108xbf16>
    %cst_16 = arith.constant dense<0.000000e+00> : vector<64x32xf32>
    %19 = tpu.matmul %18, %0, %cst_16 {dimension_numbers = #tpu.dot_dimension_numbers<[1], [0], [0], [1], [0, 0, 1, 1], [], []>} : vector<64x108xbf16>, vector<108x32xbf16>, vector<64x32xf32> -> vector<64x32xf32>
    %20 = vector.broadcast %1 : vector<1x32xf32> to vector<64x32xf32>
    %21 = arith.addf %19, %20 : vector<64x32xf32>
    %cst_17 = arith.constant 0.000000e+00 : f32
    %22 = vector.broadcast %cst_17 : f32 to vector<64x32xf32>
    %23 = arith.maximumf %21, %22 : vector<64x32xf32>
    %24 = arith.maximumf %16, %23 : vector<64x32xf32>
    %c0_18 = arith.constant 0 : index
    %c3 = arith.constant 3 : index
    %c0_19 = arith.constant 0 : index
    %c0_20 = arith.constant 0 : index
    %25 = vector.load %arg1[%c0_18, %c3, %c0_19, %c0_20] : memref<1x8x64x108xbf16, #tpu.memory_space<vmem>>, vector<1x1x64x108xbf16>
    %26 = vector.shape_cast %25 : vector<1x1x64x108xbf16> to vector<64x108xbf16>
    %cst_21 = arith.constant dense<0.000000e+00> : vector<64x32xf32>
    %27 = tpu.matmul %26, %0, %cst_21 {dimension_numbers = #tpu.dot_dimension_numbers<[1], [0], [0], [1], [0, 0, 1, 1], [], []>} : vector<64x108xbf16>, vector<108x32xbf16>, vector<64x32xf32> -> vector<64x32xf32>
    %28 = vector.broadcast %1 : vector<1x32xf32> to vector<64x32xf32>
    %29 = arith.addf %27, %28 : vector<64x32xf32>
    %cst_22 = arith.constant 0.000000e+00 : f32
    %30 = vector.broadcast %cst_22 : f32 to vector<64x32xf32>
    %31 = arith.maximumf %29, %30 : vector<64x32xf32>
    %32 = arith.maximumf %24, %31 : vector<64x32xf32>
    %c0_23 = arith.constant 0 : index
    %c4 = arith.constant 4 : index
    %c0_24 = arith.constant 0 : index
    %c0_25 = arith.constant 0 : index
    %33 = vector.load %arg1[%c0_23, %c4, %c0_24, %c0_25] : memref<1x8x64x108xbf16, #tpu.memory_space<vmem>>, vector<1x1x64x108xbf16>
    %34 = vector.shape_cast %33 : vector<1x1x64x108xbf16> to vector<64x108xbf16>
    %cst_26 = arith.constant dense<0.000000e+00> : vector<64x32xf32>
    %35 = tpu.matmul %34, %0, %cst_26 {dimension_numbers = #tpu.dot_dimension_numbers<[1], [0], [0], [1], [0, 0, 1, 1], [], []>} : vector<64x108xbf16>, vector<108x32xbf16>, vector<64x32xf32> -> vector<64x32xf32>
    %36 = vector.broadcast %1 : vector<1x32xf32> to vector<64x32xf32>
    %37 = arith.addf %35, %36 : vector<64x32xf32>
    %cst_27 = arith.constant 0.000000e+00 : f32
    %38 = vector.broadcast %cst_27 : f32 to vector<64x32xf32>
    %39 = arith.maximumf %37, %38 : vector<64x32xf32>
    %40 = arith.maximumf %32, %39 : vector<64x32xf32>
    %c0_28 = arith.constant 0 : index
    %c5 = arith.constant 5 : index
    %c0_29 = arith.constant 0 : index
    %c0_30 = arith.constant 0 : index
    %41 = vector.load %arg1[%c0_28, %c5, %c0_29, %c0_30] : memref<1x8x64x108xbf16, #tpu.memory_space<vmem>>, vector<1x1x64x108xbf16>
    %42 = vector.shape_cast %41 : vector<1x1x64x108xbf16> to vector<64x108xbf16>
    %cst_31 = arith.constant dense<0.000000e+00> : vector<64x32xf32>
    %43 = tpu.matmul %42, %0, %cst_31 {dimension_numbers = #tpu.dot_dimension_numbers<[1], [0], [0], [1], [0, 0, 1, 1], [], []>} : vector<64x108xbf16>, vector<108x32xbf16>, vector<64x32xf32> -> vector<64x32xf32>
    %44 = vector.broadcast %1 : vector<1x32xf32> to vector<64x32xf32>
    %45 = arith.addf %43, %44 : vector<64x32xf32>
    %cst_32 = arith.constant 0.000000e+00 : f32
    %46 = vector.broadcast %cst_32 : f32 to vector<64x32xf32>
    %47 = arith.maximumf %45, %46 : vector<64x32xf32>
    %48 = arith.maximumf %40, %47 : vector<64x32xf32>
    %c0_33 = arith.constant 0 : index
    %c6 = arith.constant 6 : index
    %c0_34 = arith.constant 0 : index
    %c0_35 = arith.constant 0 : index
    %49 = vector.load %arg1[%c0_33, %c6, %c0_34, %c0_35] : memref<1x8x64x108xbf16, #tpu.memory_space<vmem>>, vector<1x1x64x108xbf16>
    %50 = vector.shape_cast %49 : vector<1x1x64x108xbf16> to vector<64x108xbf16>
    %cst_36 = arith.constant dense<0.000000e+00> : vector<64x32xf32>
    %51 = tpu.matmul %50, %0, %cst_36 {dimension_numbers = #tpu.dot_dimension_numbers<[1], [0], [0], [1], [0, 0, 1, 1], [], []>} : vector<64x108xbf16>, vector<108x32xbf16>, vector<64x32xf32> -> vector<64x32xf32>
    %52 = vector.broadcast %1 : vector<1x32xf32> to vector<64x32xf32>
    %53 = arith.addf %51, %52 : vector<64x32xf32>
    %cst_37 = arith.constant 0.000000e+00 : f32
    %54 = vector.broadcast %cst_37 : f32 to vector<64x32xf32>
    %55 = arith.maximumf %53, %54 : vector<64x32xf32>
    %56 = arith.maximumf %48, %55 : vector<64x32xf32>
    %c0_38 = arith.constant 0 : index
    %c7 = arith.constant 7 : index
    %c0_39 = arith.constant 0 : index
    %c0_40 = arith.constant 0 : index
    %57 = vector.load %arg1[%c0_38, %c7, %c0_39, %c0_40] : memref<1x8x64x108xbf16, #tpu.memory_space<vmem>>, vector<1x1x64x108xbf16>
    %58 = vector.shape_cast %57 : vector<1x1x64x108xbf16> to vector<64x108xbf16>
    %cst_41 = arith.constant dense<0.000000e+00> : vector<64x32xf32>
    %59 = tpu.matmul %58, %0, %cst_41 {dimension_numbers = #tpu.dot_dimension_numbers<[1], [0], [0], [1], [0, 0, 1, 1], [], []>} : vector<64x108xbf16>, vector<108x32xbf16>, vector<64x32xf32> -> vector<64x32xf32>
    %60 = vector.broadcast %1 : vector<1x32xf32> to vector<64x32xf32>
    %61 = arith.addf %59, %60 : vector<64x32xf32>
    %cst_42 = arith.constant 0.000000e+00 : f32
    %62 = vector.broadcast %cst_42 : f32 to vector<64x32xf32>
    %63 = arith.maximumf %61, %62 : vector<64x32xf32>
    %64 = arith.maximumf %56, %63 : vector<64x32xf32>
    %65 = arith.truncf %64 : vector<64x32xf32> to vector<64x32xbf16>
    %c0_43 = arith.constant 0 : index
    %c0_44 = arith.constant 0 : index
    %c0_45 = arith.constant 0 : index
    %66 = vector.load %arg4[%c0_43, %c0_44, %c0_45] : memref<1x64x32xbf16, #tpu.memory_space<vmem>>, vector<1x64x32xbf16>
    %67 = vector.shape_cast %66 : vector<1x64x32xbf16> to vector<64x32xbf16>
    %68 = vector.shape_cast %65 : vector<64x32xbf16> to vector<1x64x32xbf16>
    tpu.vector_store %arg4[%c0_43, %c0_44, %c0_45], %68 {strides = array<i32>} : memref<1x64x32xbf16, #tpu.memory_space<vmem>>, vector<1x64x32xbf16>,
    return
  }
  func.func @transform_0(%arg0: i32) -> (i32, i32, i32, i32) {
    %c0_i32 = arith.constant 0 : i32
    %c0_i32_0 = arith.constant 0 : i32
    %c0_i32_1 = arith.constant 0 : i32
    %c0_i32_2 = arith.constant 0 : i32
    return %arg0, %c0_i32, %c0_i32_0, %c0_i32_1 : i32, i32, i32, i32
  }
  func.func @transform_1(%arg0: i32) -> (i32, i32) {
    %c0_i32 = arith.constant 0 : i32
    %c0_i32_0 = arith.constant 0 : i32
    %c0_i32_1 = arith.constant 0 : i32
    return %c0_i32, %c0_i32_0 : i32, i32
  }
  func.func @transform_2(%arg0: i32) -> (i32, i32) {
    %c0_i32 = arith.constant 0 : i32
    %c0_i32_0 = arith.constant 0 : i32
    %c0_i32_1 = arith.constant 0 : i32
    return %c0_i32, %c0_i32_0 : i32, i32
  }
  func.func @transform_3(%arg0: i32) -> (i32, i32, i32) {
    %c0_i32 = arith.constant 0 : i32
    %c0_i32_0 = arith.constant 0 : i32
    %c0_i32_1 = arith.constant 0 : i32
    return %arg0, %c0_i32, %c0_i32_0 : i32, i32, i32
  }
}

module attributes {stable_mosaic.version = 11 : i64} {
  func.func @_conv2_relu_kernel(%arg0: i32, %arg1: memref<1x64x864xbf16, #tpu.memory_space<vmem>>, %arg2: memref<864x64xbf16, #tpu.memory_space<vmem>>, %arg3: memref<1x64xf32, #tpu.memory_space<vmem>>, %arg4: memref<1x64x64xbf16, #tpu.memory_space<vmem>>) attributes {dimension_semantics = [#tpu.dimension_semantics<parallel>], iteration_bounds = array<i64: 2>, scalar_prefetch = 0 : i64, scratch_operands = 0 : i64, tpu.core_type = #tpu.core_type<tc>, window_params = [{transform_indices = @transform_0, window_bounds = array<i64: 1, 64, 864>}, {pipeline_mode = #tpu.pipeline_mode<synchronous>, transform_indices = @transform_1, window_bounds = array<i64: 864, 64>}, {pipeline_mode = #tpu.pipeline_mode<synchronous>, transform_indices = @transform_2, window_bounds = array<i64: 1, 64>}, {transform_indices = @transform_3, window_bounds = array<i64: 1, 64, 64>}]} {
    %c0 = arith.constant 0 : index
    %c0_0 = arith.constant 0 : index
    %c0_1 = arith.constant 0 : index
    %0 = vector.load %arg1[%c0, %c0_0, %c0_1] : memref<1x64x864xbf16, #tpu.memory_space<vmem>>, vector<1x64x864xbf16>
    %1 = vector.shape_cast %0 : vector<1x64x864xbf16> to vector<64x864xbf16>
    %c0_2 = arith.constant 0 : index
    %c0_3 = arith.constant 0 : index
    %2 = vector.load %arg2[%c0_2, %c0_3] : memref<864x64xbf16, #tpu.memory_space<vmem>>, vector<864x64xbf16>
    %cst = arith.constant dense<0.000000e+00> : vector<64x64xf32>
    %3 = tpu.matmul %1, %2, %cst {dimension_numbers = #tpu.dot_dimension_numbers<[1], [0], [0], [1], [0, 0, 1, 1], [], []>} : vector<64x864xbf16>, vector<864x64xbf16>, vector<64x64xf32> -> vector<64x64xf32>
    %c0_4 = arith.constant 0 : index
    %c0_5 = arith.constant 0 : index
    %4 = vector.load %arg3[%c0_4, %c0_5] : memref<1x64xf32, #tpu.memory_space<vmem>>, vector<1x64xf32>
    %5 = vector.broadcast %4 : vector<1x64xf32> to vector<64x64xf32>
    %6 = arith.addf %3, %5 : vector<64x64xf32>
    %cst_6 = arith.constant 0.000000e+00 : f32
    %7 = vector.broadcast %cst_6 : f32 to vector<64x64xf32>
    %8 = arith.maximumf %6, %7 : vector<64x64xf32>
    %9 = arith.truncf %8 : vector<64x64xf32> to vector<64x64xbf16>
    %c0_7 = arith.constant 0 : index
    %c0_8 = arith.constant 0 : index
    %c0_9 = arith.constant 0 : index
    %10 = vector.load %arg4[%c0_7, %c0_8, %c0_9] : memref<1x64x64xbf16, #tpu.memory_space<vmem>>, vector<1x64x64xbf16>
    %11 = vector.shape_cast %10 : vector<1x64x64xbf16> to vector<64x64xbf16>
    %12 = vector.shape_cast %9 : vector<64x64xbf16> to vector<1x64x64xbf16>
    tpu.vector_store %arg4[%c0_7, %c0_8, %c0_9], %12 {strides = array<i32>} : memref<1x64x64xbf16, #tpu.memory_space<vmem>>, vector<1x64x64xbf16>,
    return
  }
  func.func @transform_0(%arg0: i32) -> (i32, i32, i32) {
    %c0_i32 = arith.constant 0 : i32
    %c0_i32_0 = arith.constant 0 : i32
    %c0_i32_1 = arith.constant 0 : i32
    return %arg0, %c0_i32, %c0_i32_0 : i32, i32, i32
  }
  func.func @transform_1(%arg0: i32) -> (i32, i32) {
    %c0_i32 = arith.constant 0 : i32
    %c0_i32_0 = arith.constant 0 : i32
    %c0_i32_1 = arith.constant 0 : i32
    return %c0_i32, %c0_i32_0 : i32, i32
  }
  func.func @transform_2(%arg0: i32) -> (i32, i32) {
    %c0_i32 = arith.constant 0 : i32
    %c0_i32_0 = arith.constant 0 : i32
    %c0_i32_1 = arith.constant 0 : i32
    return %c0_i32, %c0_i32_0 : i32, i32
  }
  func.func @transform_3(%arg0: i32) -> (i32, i32, i32) {
    %c0_i32 = arith.constant 0 : i32
    %c0_i32_0 = arith.constant 0 : i32
    %c0_i32_1 = arith.constant 0 : i32
    return %arg0, %c0_i32, %c0_i32_0 : i32, i32, i32
  }
}

module attributes {stable_mosaic.version = 11 : i64} {
  func.func @_head_kernel(%arg0: i32, %arg1: memref<2x1024xbf16, #tpu.memory_space<vmem>>, %arg2: memref<2x1024xf32, #tpu.memory_space<vmem>>, %arg3: memref<1024x128xbf16, #tpu.memory_space<vmem>>, %arg4: memref<1x128xf32, #tpu.memory_space<vmem>>, %arg5: memref<128x10xf32, #tpu.memory_space<vmem>>, %arg6: memref<1x10xf32, #tpu.memory_space<vmem>>, %arg7: memref<2x1xi32, #tpu.memory_space<vmem>>, %arg8: memref<2x10xf32, #tpu.memory_space<vmem>>, %arg9: memref<1x1xf32, #tpu.memory_space<vmem>>, %arg10: memref<2x128xf32, #tpu.memory_space<vmem>>) attributes {dimension_semantics = [#tpu.dimension_semantics<arbitrary>], iteration_bounds = array<i64: 4>, scalar_prefetch = 0 : i64, scratch_operands = 1 : i64, tpu.core_type = #tpu.core_type<tc>, window_params = [{transform_indices = @transform_0, window_bounds = array<i64: 2, 1024>}, {transform_indices = @transform_1, window_bounds = array<i64: 2, 1024>}, {transform_indices = @transform_2, window_bounds = array<i64: 1024, 128>}, {pipeline_mode = #tpu.pipeline_mode<synchronous>, transform_indices = @transform_3, window_bounds = array<i64: 1, 128>}, {pipeline_mode = #tpu.pipeline_mode<synchronous>, transform_indices = @transform_4, window_bounds = array<i64: 128, 10>}, {pipeline_mode = #tpu.pipeline_mode<synchronous>, transform_indices = @transform_5, window_bounds = array<i64: 1, 10>}, {pipeline_mode = #tpu.pipeline_mode<synchronous>, transform_indices = @transform_6, window_bounds = array<i64: 2, 1>}, {pipeline_mode = #tpu.pipeline_mode<synchronous>, transform_indices = @transform_7, window_bounds = array<i64: 2, 10>}, {pipeline_mode = #tpu.pipeline_mode<synchronous>, transform_indices = @transform_8, window_bounds = array<i64: 1, 1>}]} {
    %c0_i32 = arith.constant 0 : i32
    %0 = arith.cmpi eq, %arg0, %c0_i32 : i32
    %1 = arith.extui %0 : i1 to i32
    %c0_i32_0 = arith.constant 0 : i32
    %2 = arith.cmpi ne, %1, %c0_i32_0 : i32
    scf.if %2 {
      %cst_14 = arith.constant 0.000000e+00 : f32
      %21 = vector.broadcast %cst_14 : f32 to vector<2x128xf32>
      %c0_15 = arith.constant 0 : index
      %c0_16 = arith.constant 0 : index
      %22 = vector.load %arg10[%c0_15, %c0_16] : memref<2x128xf32, #tpu.memory_space<vmem>>, vector<2x128xf32>
      tpu.vector_store %arg10[%c0_15, %c0_16], %21 {strides = array<i32>} : memref<2x128xf32, #tpu.memory_space<vmem>>, vector<2x128xf32>,
    } else {
    }
    %c0 = arith.constant 0 : index
    %c0_1 = arith.constant 0 : index
    %3 = vector.load %arg2[%c0, %c0_1] : memref<2x1024xf32, #tpu.memory_space<vmem>>, vector<2x1024xf32>
    %cst = arith.constant 8.000000e-01 : f32
    %4 = vector.broadcast %cst : f32 to vector<2x1024xf32>
    %5 = arith.cmpf olt, %3, %4 : vector<2x1024xf32>
    %c0_2 = arith.constant 0 : index
    %c0_3 = arith.constant 0 : index
    %6 = vector.load %arg1[%c0_2, %c0_3] : memref<2x1024xbf16, #tpu.memory_space<vmem>>, vector<2x1024xbf16>
    %7 = arith.extf %6 : vector<2x1024xbf16> to vector<2x1024xf32>
    %cst_4 = arith.constant 1.250000e+00 : f32
    %8 = vector.broadcast %cst_4 : f32 to vector<2x1024xf32>
    %9 = arith.mulf %7, %8 : vector<2x1024xf32>
    %cst_5 = arith.constant 0.000000e+00 : f32
    %10 = vector.broadcast %cst_5 : f32 to vector<2x1024xf32>
    %11 = arith.select %5, %9, %10 : vector<2x1024xi1>, vector<2x1024xf32>
    %c0_6 = arith.constant 0 : index
    %c0_7 = arith.constant 0 : index
    %12 = vector.load %arg10[%c0_6, %c0_7] : memref<2x128xf32, #tpu.memory_space<vmem>>, vector<2x128xf32>
    %13 = arith.truncf %11 : vector<2x1024xf32> to vector<2x1024xbf16>
    %c0_8 = arith.constant 0 : index
    %c0_9 = arith.constant 0 : index
    %14 = vector.load %arg3[%c0_8, %c0_9] : memref<1024x128xbf16, #tpu.memory_space<vmem>>, vector<1024x128xbf16>
    %cst_10 = arith.constant dense<0.000000e+00> : vector<2x128xf32>
    %15 = tpu.matmul %13, %14, %cst_10 {dimension_numbers = #tpu.dot_dimension_numbers<[1], [0], [0], [1], [0, 0, 1, 1], [], []>} : vector<2x1024xbf16>, vector<1024x128xbf16>, vector<2x128xf32> -> vector<2x128xf32>
    %16 = arith.addf %12, %15 : vector<2x128xf32>
    %c0_11 = arith.constant 0 : index
    %c0_12 = arith.constant 0 : index
    %17 = vector.load %arg10[%c0_11, %c0_12] : memref<2x128xf32, #tpu.memory_space<vmem>>, vector<2x128xf32>
    tpu.vector_store %arg10[%c0_11, %c0_12], %16 {strides = array<i32>} : memref<2x128xf32, #tpu.memory_space<vmem>>, vector<2x128xf32>,
    %c3_i32 = arith.constant 3 : i32
    %18 = arith.cmpi eq, %arg0, %c3_i32 : i32
    %19 = arith.extui %18 : i1 to i32
    %c0_i32_13 = arith.constant 0 : i32
    %20 = arith.cmpi ne, %19, %c0_i32_13 : i32
    scf.if %20 {
      %c0_14 = arith.constant 0 : index
      %c0_15 = arith.constant 0 : index
      %21 = vector.load %arg10[%c0_14, %c0_15] : memref<2x128xf32, #tpu.memory_space<vmem>>, vector<2x128xf32>
      %c0_16 = arith.constant 0 : index
      %c0_17 = arith.constant 0 : index
      %22 = vector.load %arg4[%c0_16, %c0_17] : memref<1x128xf32, #tpu.memory_space<vmem>>, vector<1x128xf32>
      %23 = vector.broadcast %22 : vector<1x128xf32> to vector<2x128xf32>
      %24 = arith.addf %21, %23 : vector<2x128xf32>
      %cst_18 = arith.constant 0.000000e+00 : f32
      %25 = vector.broadcast %cst_18 : f32 to vector<2x128xf32>
      %26 = arith.maximumf %24, %25 : vector<2x128xf32>
      %c0_19 = arith.constant 0 : index
      %c0_20 = arith.constant 0 : index
      %27 = vector.load %arg5[%c0_19, %c0_20] : memref<128x10xf32, #tpu.memory_space<vmem>>, vector<128x10xf32>
      %cst_21 = arith.constant dense<0.000000e+00> : vector<2x10xf32>
      %28 = tpu.matmul %26, %27, %cst_21 {dimension_numbers = #tpu.dot_dimension_numbers<[1], [0], [0], [1], [0, 0, 1, 1], [], []>} : vector<2x128xf32>, vector<128x10xf32>, vector<2x10xf32> -> vector<2x10xf32>
      %c0_22 = arith.constant 0 : index
      %c0_23 = arith.constant 0 : index
      %29 = vector.load %arg6[%c0_22, %c0_23] : memref<1x10xf32, #tpu.memory_space<vmem>>, vector<1x10xf32>
      %30 = vector.broadcast %29 : vector<1x10xf32> to vector<2x10xf32>
      %31 = arith.addf %28, %30 : vector<2x10xf32>
      %c0_24 = arith.constant 0 : index
      %c0_25 = arith.constant 0 : index
      %32 = vector.load %arg8[%c0_24, %c0_25] : memref<2x10xf32, #tpu.memory_space<vmem>>, vector<2x10xf32>
      tpu.vector_store %arg8[%c0_24, %c0_25], %31 {strides = array<i32>} : memref<2x10xf32, #tpu.memory_space<vmem>>, vector<2x10xf32>,
      %cst_26 = arith.constant dense<0xFF800000> : vector<2xf32>
      %33 = vector.multi_reduction <maximumf>, %31, %cst_26 [1] : vector<2x10xf32> to vector<2xf32>
      %34 = vector.shape_cast %33 : vector<2xf32> to vector<2x1xf32>
      %35 = vector.broadcast %34 : vector<2x1xf32> to vector<2x10xf32>
      %36 = arith.subf %31, %35 : vector<2x10xf32>
      %37 = math.exp %36 : vector<2x10xf32>
      %cst_27 = arith.constant dense<0.000000e+00> : vector<2xf32>
      %38 = vector.multi_reduction <add>, %37, %cst_27 [1] : vector<2x10xf32> to vector<2xf32>
      %39 = vector.shape_cast %38 : vector<2xf32> to vector<2x1xf32>
      %40 = math.log %39 : vector<2x1xf32>
      %41 = arith.addf %40, %34 : vector<2x1xf32>
      %42 = tpu.iota {dimensions = array<i32: 1>} : vector<2x10xi32>
      %c0_28 = arith.constant 0 : index
      %c0_29 = arith.constant 0 : index
      %43 = vector.load %arg7[%c0_28, %c0_29] : memref<2x1xi32, #tpu.memory_space<vmem>>, vector<2x1xi32>
      %44 = vector.broadcast %43 : vector<2x1xi32> to vector<2x10xi32>
      %45 = arith.cmpi eq, %42, %44 : vector<2x10xi32>
      %cst_30 = arith.constant 0.000000e+00 : f32
      %46 = vector.broadcast %cst_30 : f32 to vector<2x10xf32>
      %47 = arith.select %45, %31, %46 : vector<2x10xi1>, vector<2x10xf32>
      %cst_31 = arith.constant dense<0.000000e+00> : vector<2xf32>
      %48 = vector.multi_reduction <add>, %47, %cst_31 [1] : vector<2x10xf32> to vector<2xf32>
      %49 = vector.shape_cast %48 : vector<2xf32> to vector<2x1xf32>
      %50 = arith.subf %41, %49 : vector<2x1xf32>
      %cst_32 = arith.constant dense<0.000000e+00> : vector<1xf32>
      %51 = vector.multi_reduction <add>, %50, %cst_32 [0] : vector<2x1xf32> to vector<1xf32>
      %52 = vector.shape_cast %51 : vector<1xf32> to vector<1x1xf32>
      %cst_33 = arith.constant 2.000000e+00 : f32
      %53 = vector.broadcast %cst_33 : f32 to vector<1x1xf32>
      %54 = arith.divf %52, %53 : vector<1x1xf32>
      %c0_34 = arith.constant 0 : index
      %c0_35 = arith.constant 0 : index
      %55 = vector.load %arg9[%c0_34, %c0_35] : memref<1x1xf32, #tpu.memory_space<vmem>>, vector<1x1xf32>
      tpu.vector_store %arg9[%c0_34, %c0_35], %54 {strides = array<i32>} : memref<1x1xf32, #tpu.memory_space<vmem>>, vector<1x1xf32>,
    } else {
    }
    return
  }
  func.func @transform_0(%arg0: i32) -> (i32, i32) {
    %c0_i32 = arith.constant 0 : i32
    %c0_i32_0 = arith.constant 0 : i32
    return %c0_i32, %arg0 : i32, i32
  }
  func.func @transform_1(%arg0: i32) -> (i32, i32) {
    %c0_i32 = arith.constant 0 : i32
    %c0_i32_0 = arith.constant 0 : i32
    return %c0_i32, %arg0 : i32, i32
  }
  func.func @transform_2(%arg0: i32) -> (i32, i32) {
    %c0_i32 = arith.constant 0 : i32
    %c0_i32_0 = arith.constant 0 : i32
    return %arg0, %c0_i32 : i32, i32
  }
  func.func @transform_3(%arg0: i32) -> (i32, i32) {
    %c0_i32 = arith.constant 0 : i32
    %c0_i32_0 = arith.constant 0 : i32
    %c0_i32_1 = arith.constant 0 : i32
    return %c0_i32, %c0_i32_0 : i32, i32
  }
  func.func @transform_4(%arg0: i32) -> (i32, i32) {
    %c0_i32 = arith.constant 0 : i32
    %c0_i32_0 = arith.constant 0 : i32
    %c0_i32_1 = arith.constant 0 : i32
    return %c0_i32, %c0_i32_0 : i32, i32
  }
  func.func @transform_5(%arg0: i32) -> (i32, i32) {
    %c0_i32 = arith.constant 0 : i32
    %c0_i32_0 = arith.constant 0 : i32
    %c0_i32_1 = arith.constant 0 : i32
    return %c0_i32, %c0_i32_0 : i32, i32
  }
  func.func @transform_6(%arg0: i32) -> (i32, i32) {
    %c0_i32 = arith.constant 0 : i32
    %c0_i32_0 = arith.constant 0 : i32
    %c0_i32_1 = arith.constant 0 : i32
    return %c0_i32, %c0_i32_0 : i32, i32
  }
  func.func @transform_7(%arg0: i32) -> (i32, i32) {
    %c0_i32 = arith.constant 0 : i32
    %c0_i32_0 = arith.constant 0 : i32
    %c0_i32_1 = arith.constant 0 : i32
    return %c0_i32, %c0_i32_0 : i32, i32
  }
  func.func @transform_8(%arg0: i32) -> (i32, i32) {
    %c0_i32 = arith.constant 0 : i32
    %c0_i32_0 = arith.constant 0 : i32
    %c0_i32_1 = arith.constant 0 : i32
    return %c0_i32, %c0_i32_0 : i32, i32
  }
}

</mosaic_0001>

<bundles_post_ra>
// kernel: baseline_3dconvnet_forward.3
= control target key start
LH: loop header
LB: loop body
LE: loop exit
PB: predicated region body
PF: predicated region fallthrough
CT: control target
= control target key end

     0   :  { %s1806_s12 = smov 0   ;;  %s2151_s0 = inlined_call_operand.vmem [shape: bf16[2,8,64,108], index: 0, kind: input, shape index: {}]   ;;  %s2152_s1 = inlined_call_operand.vmem [shape: bf16[108,32], index: 1, kind: input, shape index: {}]   ;;  %s2153_s2 = inlined_call_operand.vmem [shape: f32[1,32], index: 2, kind: input, shape index: {}]   ;;  %s2154_s3 = inlined_call_operand.vmem [shape: bf16[2,64,32], index: 3, kind: output, shape index: {}]  }
   0x1 LB: > { %s1302_s13 = sadd.s32 4294967295, %s1784_s12   ;;  %p1306_p0 = scmp.ge.s32.totalorder %s1784_s12, 1  ;;  %s1784_s12 = sphi %s1806_s12, %s13_s12  }
   0x2   : > { %p137_p1 = scmp.lt.s32.totalorder %s1784_s12, 3 }
   0x4   : > { %p138_p2 = pnand %p1306_p0, %p137_p1 }
   0x5   : > { %v1817_v0 = vld [vmem:[%s2152_s1] sm:$0xff] (!%p138_p2)   ;;  %v1822_v1 = vld [vmem:[%s2152_s1 + $0x8] sm:$0xff] (!%p138_p2)   ;;  %p161_p3 = scmp.lt.s32.totalorder (!%p138_p2), %s1302_s13, 1  ;;  %v1835_v2 = vld [vmem:[%s2152_s1 + $0x10] sm:$0xff] (!%p138_p2)   ;;  %vm262_vm0 = vcmask (!%p138_p2), 883712   ;;  %vm275_vm1 = vcmask (!%p138_p2), 1045504  }
   0x6   : > { %141 = sbr.rel (%p138_p2) target bundleno = 353 (0x161), region = 32  ;;  %1547 = vmatprep.subr.bf16.mxu0 (!%p138_p2), %v1817_v0  ;;  %1569 = vmatprep.subr.bf16.mxu1 (!%p138_p2), %v1817_v0  ;;  %v1841_v3 = vld [vmem:[%s2152_s1 + $0x18] sm:$0xff] (!%p138_p2)   ;;  %v1863_v6 = vld [vmem:[%s2152_s1 + $0x20] sm:$0xff] (!%p138_p2)   ;;  %v1872_v7 = vld [vmem:[%s2152_s1 + $0x28] sm:$0xff] (!%p138_p2)   ;;  %vm1238_vm2 = vcmask (!%p138_p2), 257024  }
   0x7   : > { %1548 = vmatpush3.bf16.msra.mxu0 (!%p138_p2), %v1817_v0  ;;  %1570 = vmatpush3.bf16.msra.mxu1 (!%p138_p2), %v1817_v0  ;;  %v1881_v8 = vld [vmem:[%s2152_s1 + $0x30] sm:$0x3f] (!%p138_p2)   ;;  %v2048_v40 = vld [vmem:[%s2153_s2] ss:$0 sm:$0xff] (!%p138_p2) }
   0x8   : > { %1549 = vmatprep.subr.bf16.mxu0 (!%p138_p2), %v1822_v1  ;;  %1571 = vmatprep.subr.bf16.mxu1 (!%p138_p2), %v1822_v1  ;;  %v1891_v9 = vsel (!%p138_p2), %vm275_vm1, %v1881_v8, 0 }
   0xb   : > { %1550 = vmatpush3.bf16.msra.mxu0 (!%p138_p2), %v1822_v1  ;;  %1572 = vmatpush3.bf16.msra.mxu1 (!%p138_p2), %v1822_v1 }
   0xc   : > { %1551 = vmatprep.subr.bf16.mxu0 (!%p138_p2), %v1835_v2  ;;  %1573 = vmatprep.subr.bf16.mxu1 (!%p138_p2), %v1835_v2 }
   0xd   : > { %s2156_s13 = smov (!%p161_p3, %s1302_s13), 1 }
   0xe   : > { %s1449_s20 = sshll.u32 %s2156_s13, 8  ;;  %s1450_s7 = sshll.u32 %s2156_s13, 5 }
   0xf   : > { %s1846_s25 = scalar_lea.vmem %s2151_s0, %s1449_s20  ;;  %1552 = vmatpush3.bf16.msra.mxu0 %v1835_v2  ;;  %1574 = vmatpush3.bf16.msra.mxu1 %v1835_v2  ;;  %s2118_s10 = scalar_lea.vmem %s2154_s3, %s1450_s7 }
  0x10   : > { %v1746_v4 = vld [vmem:[%s1846_s25] sm:$0xff]   ;;  %1553 = vmatprep.subr.bf16.mxu0 %v1841_v3  ;;  %1575 = vmatprep.subr.bf16.mxu1 %v1841_v3  ;;  %v1748_v10 = vld [vmem:[%s1846_s25 + $0x8] sm:$0xff]   ;;  %v1750_v12 = vld [vmem:[%s1846_s25 + $0x10] sm:$0xff]  }
  0x11   : > { %v1747_v5 = vld [vmem:[%s1846_s25 + $0x20] sm:$0xff]   ;;  %1561 = vmatprep.mubr.msk.bf16.mxu0 %vm262_vm0, %v1746_v4  ;;  %v1749_v11 = vld [vmem:[%s1846_s25 + $0x28] sm:$0xff]   ;;  %v1751_v13 = vld [vmem:[%s1846_s25 + $0x30] sm:$0xff]  }
  0x12   : > { %1583 = vmatprep.mubr.msk.bf16.mxu1 %vm262_vm0, %v1747_v5  ;;  %v1752_v14 = vld [vmem:[%s1846_s25 + $0x18] sm:$0xff]   ;;  %v1754_v16 = vld [vmem:[%s1846_s25 + $0x40] sm:$0xff]   ;;  %v1756_v18 = vld [vmem:[%s1846_s25 + $0x48] sm:$0xff]  }
  0x13   : > { %1554 = vmatpush3.bf16.msra.mxu0 %v1841_v3  ;;  %1576 = vmatpush3.bf16.msra.mxu1 %v1841_v3  ;;  %v1753_v15 = vld [vmem:[%s1846_s25 + $0x38] sm:$0xff]   ;;  %v1755_v17 = vld [vmem:[%s1846_s25 + $0x60] sm:$0xff]   ;;  %v1757_v19 = vld [vmem:[%s1846_s25 + $0x68] sm:$0xff]  }
  0x14   : > { %1555 = vmatprep.subr.bf16.mxu0 %v1863_v6  ;;  %1577 = vmatprep.subr.bf16.mxu1 %v1863_v6  ;;  %v1758_v20 = vld [vmem:[%s1846_s25 + $0x50] sm:$0xff]   ;;  %v1759_v22 = vld [vmem:[%s1846_s25 + $0x58] sm:$0xff]   ;;  %v1762_v24 = vld [vmem:[%s1846_s25 + $0x80] sm:$0xff]  }
  0x15   : > { %v1760_v21 = vld [vmem:[%s1846_s25 + $0x70] sm:$0xff]   ;;  %v1761_v23 = vld [vmem:[%s1846_s25 + $0x78] sm:$0xff]   ;;  %v1763_v25 = vld [vmem:[%s1846_s25 + $0xa0] sm:$0xff]  }
  0x16   : > { %v1764_v26 = vld [vmem:[%s1846_s25 + $0x88] sm:$0xff]   ;;  %v1766_v28 = vld [vmem:[%s1846_s25 + $0x90] sm:$0xff]   ;;  %v1767_v30 = vld [vmem:[%s1846_s25 + $0x98] sm:$0xff]  }
  0x17   : > { %1556 = vmatpush3.bf16.msra.mxu0 %v1863_v6  ;;  %1578 = vmatpush3.bf16.msra.mxu1 %v1863_v6  ;;  %v1765_v27 = vld [vmem:[%s1846_s25 + $0xa8] sm:$0xff]   ;;  %v1768_v29 = vld [vmem:[%s1846_s25 + $0xb0] sm:$0xff]   ;;  %v1769_v31 = vld [vmem:[%s1846_s25 + $0xb8] sm:$0xff]  }
  0x18   : > { %1557 = vmatprep.subr.bf16.mxu0 %v1872_v7  ;;  %1579 = vmatprep.subr.bf16.mxu1 %v1872_v7  ;;  %v1770_v32 = vld [vmem:[%s1846_s25 + $0xc0] sm:$0xff]   ;;  %v1772_v34 = vld [vmem:[%s1846_s25 + $0xc8] sm:$0xff]   ;;  %v1774_v36 = vld [vmem:[%s1846_s25 + $0xd0] sm:$0xff]  }
  0x19   : > { %v1771_v33 = vld [vmem:[%s1846_s25 + $0xe0] sm:$0xff]   ;;  %v1773_v35 = vld [vmem:[%s1846_s25 + $0xe8] sm:$0xff]   ;;  %v1775_v37 = vld [vmem:[%s1846_s25 + $0xf0] sm:$0xff]  }
  0x1a   : > { %v1776_v38 = vld [vmem:[%s1846_s25 + $0xd8] sm:$0xff]  }
  0x1b   : > { %1558 = vmatpush3.bf16.msra.mxu0 %v1872_v7  ;;  %1580 = vmatpush3.bf16.msra.mxu1 %v1872_v7  ;;  %v1777_v39 = vld [vmem:[%s1846_s25 + $0xf8] sm:$0xff]  }
  0x1c   : > { %1723 = vmatprep.subr.msk.bf16.mxu0 %vm275_vm1, %v1881_v8  ;;  %1724 = vmatprep.subr.msk.bf16.mxu1 %vm275_vm1, %v1881_v8 }
  0x1f   : > { %1560 = vmatpush3.bf16.msra.mxu0 %v1891_v9  ;;  %1582 = vmatpush3.bf16.msra.mxu1 %v1891_v9 }
  0x20   : > { %1591 = vmatprep.subr.bf16.mxu0 %v1817_v0  ;;  %1613 = vmatprep.subr.bf16.mxu1 %v1817_v0 }
  0x22   : > { %1562 = vmatmul.mubr.msk.bf16.vlgmr.msra.gmra.mrb[0].mxu0 %vm262_vm0, %v1748_v10  ;;  %1584 = vmatmul.mubr.msk.bf16.vlgmr.msra.gmra.mrb[0].mxu1 %vm262_vm0, %v1749_v11 }
  0x23   : > { %1592 = vmatpush3.bf16.msra.mxu0 %v1817_v0  ;;  %1614 = vmatpush3.bf16.msra.mxu1 %v1817_v0 }
  0x24   : > { %1593 = vmatprep.subr.bf16.mxu0 %v1822_v1  ;;  %1615 = vmatprep.subr.bf16.mxu1 %v1822_v1 }
  0x25   : > { %1565 = vmatprep.mubr.msk.bf16.mxu0 %vm262_vm0, %v1750_v12  ;;  %1587 = vmatprep.mubr.msk.bf16.mxu1 %vm262_vm0, %v1751_v13 }
  0x27   : > { %1594 = vmatpush3.bf16.msra.mxu0 %v1822_v1  ;;  %1616 = vmatpush3.bf16.msra.mxu1 %v1822_v1 }
  0x28   : > { %1595 = vmatprep.subr.bf16.mxu0 %v1835_v2  ;;  %1617 = vmatprep.subr.bf16.mxu1 %v1835_v2 }
  0x2a   : > { %1566 = vmatmul.mubr.msk.bf16.gmra.mrb[4].mxu0 %vm262_vm0, %v1752_v14  ;;  %1588 = vmatmul.mubr.msk.bf16.gmra.mrb[4].mxu1 %vm262_vm0, %v1753_v15 }
  0x2b   : > { %1596 = vmatpush3.bf16.msra.mxu0 %v1835_v2  ;;  %1618 = vmatpush3.bf16.msra.mxu1 %v1835_v2 }
  0x2c   : > { %1597 = vmatprep.subr.bf16.mxu0 %v1841_v3  ;;  %1619 = vmatprep.subr.bf16.mxu1 %v1841_v3 }
  0x2d   : > { %1605 = vmatprep.mubr.msk.bf16.mxu0 %vm262_vm0, %v1754_v16  ;;  %1627 = vmatprep.mubr.msk.bf16.mxu1 %vm262_vm0, %v1755_v17 }
  0x2f   : > { %1598 = vmatpush3.bf16.msra.mxu0 %v1841_v3  ;;  %1620 = vmatpush3.bf16.msra.mxu1 %v1841_v3 }
  0x30   : > { %1599 = vmatprep.subr.bf16.mxu0 %v1863_v6  ;;  %1621 = vmatprep.subr.bf16.mxu1 %v1863_v6 }
  0x33   : > { %1600 = vmatpush3.bf16.msra.mxu0 %v1863_v6  ;;  %1622 = vmatpush3.bf16.msra.mxu1 %v1863_v6 }
  0x34   : > { %1601 = vmatprep.subr.bf16.mxu0 %v1872_v7  ;;  %1623 = vmatprep.subr.bf16.mxu1 %v1872_v7 }
  0x37   : > { %1602 = vmatpush3.bf16.msra.mxu0 %v1872_v7  ;;  %1624 = vmatpush3.bf16.msra.mxu1 %v1872_v7 }
  0x38   : > { %1725 = vmatprep.subr.msk.bf16.mxu0 %vm275_vm1, %v1881_v8  ;;  %1726 = vmatprep.subr.msk.bf16.mxu1 %vm275_vm1, %v1881_v8 }
  0x3b   : > { %1604 = vmatpush3.bf16.msra.mxu0 %v1891_v9  ;;  %1626 = vmatpush3.bf16.msra.mxu1 %v1891_v9 }
  0x3c   : > { %1635 = vmatprep.subr.bf16.mxu0 %v1817_v0  ;;  %1657 = vmatprep.subr.bf16.mxu1 %v1817_v0 }
  0x3e   : > { %1606 = vmatmul.mubr.msk.bf16.vlgmr.msra.gmra.mrb[8].mxu0 %vm262_vm0, %v1756_v18  ;;  %1628 = vmatmul.mubr.msk.bf16.vlgmr.msra.gmra.mrb[8].mxu1 %vm262_vm0, %v1757_v19 }
  0x3f   : > { %1636 = vmatpush3.bf16.msra.mxu0 %v1817_v0  ;;  %1658 = vmatpush3.bf16.msra.mxu1 %v1817_v0 }
  0x40   : > { %1637 = vmatprep.subr.bf16.mxu0 %v1822_v1  ;;  %1659 = vmatprep.subr.bf16.mxu1 %v1822_v1 }
  0x41   : > { %1609 = vmatprep.mubr.msk.bf16.mxu0 %vm262_vm0, %v1758_v20  ;;  %1631 = vmatprep.mubr.msk.bf16.mxu1 %vm262_vm0, %v1760_v21 }
  0x43   : > { %1638 = vmatpush3.bf16.msra.mxu0 %v1822_v1  ;;  %1660 = vmatpush3.bf16.msra.mxu1 %v1822_v1 }
  0x44   : > { %1639 = vmatprep.subr.bf16.mxu0 %v1835_v2  ;;  %1661 = vmatprep.subr.bf16.mxu1 %v1835_v2 }
  0x46   : > { %1610 = vmatmul.mubr.msk.bf16.gmra.mrb[12].mxu0 %vm262_vm0, %v1759_v22  ;;  %1632 = vmatmul.mubr.msk.bf16.gmra.mrb[12].mxu1 %vm262_vm0, %v1761_v23 }
  0x47   : > { %1640 = vmatpush3.bf16.msra.mxu0 %v1835_v2  ;;  %1662 = vmatpush3.bf16.msra.mxu1 %v1835_v2 }
  0x48   : > { %1641 = vmatprep.subr.bf16.mxu0 %v1841_v3  ;;  %1663 = vmatprep.subr.bf16.mxu1 %v1841_v3 }
  0x49   : > { %1649 = vmatprep.mubr.msk.bf16.mxu0 %vm262_vm0, %v1762_v24  ;;  %1671 = vmatprep.mubr.msk.bf16.mxu1 %vm262_vm0, %v1763_v25 }
  0x4b   : > { %1642 = vmatpush3.bf16.msra.mxu0 %v1841_v3  ;;  %1664 = vmatpush3.bf16.msra.mxu1 %v1841_v3 }
  0x4c   : > { %1643 = vmatprep.subr.bf16.mxu0 %v1863_v6  ;;  %1665 = vmatprep.subr.bf16.mxu1 %v1863_v6 }
  0x4f   : > { %1644 = vmatpush3.bf16.msra.mxu0 %v1863_v6  ;;  %1666 = vmatpush3.bf16.msra.mxu1 %v1863_v6 }
  0x50   : > { %1645 = vmatprep.subr.bf16.mxu0 %v1872_v7  ;;  %1667 = vmatprep.subr.bf16.mxu1 %v1872_v7 }
  0x53   : > { %1646 = vmatpush3.bf16.msra.mxu0 %v1872_v7  ;;  %1668 = vmatpush3.bf16.msra.mxu1 %v1872_v7 }
  0x54   : > { %1727 = vmatprep.subr.msk.bf16.mxu0 %vm275_vm1, %v1881_v8  ;;  %1728 = vmatprep.subr.msk.bf16.mxu1 %vm275_vm1, %v1881_v8 }
  0x57   : > { %1648 = vmatpush3.bf16.msra.mxu0 %v1891_v9  ;;  %1670 = vmatpush3.bf16.msra.mxu1 %v1891_v9 }
  0x58   : > { %1679 = vmatprep.subr.bf16.mxu0 %v1817_v0  ;;  %1701 = vmatprep.subr.bf16.mxu1 %v1817_v0 }
  0x5a   : > { %1650 = vmatmul.mubr.msk.bf16.vlgmr.msra.gmra.mrb[16].mxu0 %vm262_vm0, %v1764_v26  ;;  %1672 = vmatmul.mubr.msk.bf16.vlgmr.msra.gmra.mrb[16].mxu1 %vm262_vm0, %v1765_v27 }
  0x5b   : > { %1680 = vmatpush3.bf16.msra.mxu0 %v1817_v0  ;;  %1702 = vmatpush3.bf16.msra.mxu1 %v1817_v0 }
  0x5c   : > { %1681 = vmatprep.subr.bf16.mxu0 %v1822_v1  ;;  %1703 = vmatprep.subr.bf16.mxu1 %v1822_v1 }
  0x5d   : > { %1653 = vmatprep.mubr.msk.bf16.mxu0 %vm262_vm0, %v1766_v28  ;;  %1675 = vmatprep.mubr.msk.bf16.mxu1 %vm262_vm0, %v1768_v29 }
  0x5f   : > { %1682 = vmatpush3.bf16.msra.mxu0 %v1822_v1  ;;  %1704 = vmatpush3.bf16.msra.mxu1 %v1822_v1 }
  0x60   : > { %1683 = vmatprep.subr.bf16.mxu0 %v1835_v2  ;;  %1705 = vmatprep.subr.bf16.mxu1 %v1835_v2 }
  0x62   : > { %1654 = vmatmul.mubr.msk.bf16.gmra.mrb[20].mxu0 %vm262_vm0, %v1767_v30  ;;  %1676 = vmatmul.mubr.msk.bf16.gmra.mrb[20].mxu1 %vm262_vm0, %v1769_v31 }
  0x63   : > { %1684 = vmatpush3.bf16.msra.mxu0 %v1835_v2  ;;  %1706 = vmatpush3.bf16.msra.mxu1 %v1835_v2 }
  0x64   : > { %1685 = vmatprep.subr.bf16.mxu0 %v1841_v3  ;;  %1707 = vmatprep.subr.bf16.mxu1 %v1841_v3 }
  0x65   : > { %1693 = vmatprep.mubr.msk.bf16.mxu0 %vm262_vm0, %v1770_v32  ;;  %1715 = vmatprep.mubr.msk.bf16.mxu1 %vm262_vm0, %v1771_v33 }
  0x67   : > { %1686 = vmatpush3.bf16.msra.mxu0 %v1841_v3  ;;  %1708 = vmatpush3.bf16.msra.mxu1 %v1841_v3 }
  0x68   : > { %1687 = vmatprep.subr.bf16.mxu0 %v1863_v6  ;;  %1709 = vmatprep.subr.bf16.mxu1 %v1863_v6 }
  0x6b   : > { %1688 = vmatpush3.bf16.msra.mxu0 %v1863_v6  ;;  %1710 = vmatpush3.bf16.msra.mxu1 %v1863_v6 }
  0x6c   : > { %1689 = vmatprep.subr.bf16.mxu0 %v1872_v7  ;;  %1711 = vmatprep.subr.bf16.mxu1 %v1872_v7 }
  0x6f   : > { %1690 = vmatpush3.bf16.msra.mxu0 %v1872_v7  ;;  %1712 = vmatpush3.bf16.msra.mxu1 %v1872_v7 }
  0x70   : > { %1729 = vmatprep.subr.msk.bf16.mxu0 %vm275_vm1, %v1881_v8  ;;  %1730 = vmatprep.subr.msk.bf16.mxu1 %vm275_vm1, %v1881_v8 }
  0x73   : > { %1692 = vmatpush3.bf16.msra.mxu0 %v1891_v9  ;;  %1714 = vmatpush3.bf16.msra.mxu1 %v1891_v9 }
  0x76   : > { %1694 = vmatmul.mubr.msk.bf16.vlgmr.msra.gmra.mrb[24].mxu0 %vm262_vm0, %v1772_v34  ;;  %1716 = vmatmul.mubr.msk.bf16.vlgmr.msra.gmra.mrb[24].mxu1 %vm262_vm0, %v1773_v35 }
  0x77   : > { %1697 = vmatprep.mubr.msk.bf16.mxu0 %vm262_vm0, %v1774_v36  ;;  %1719 = vmatprep.mubr.msk.bf16.mxu1 %vm262_vm0, %v1775_v37 }
  0x7e   : > { %1698 = vmatmul.mubr.msk.bf16.gmra.mrb[28].mxu0 %vm262_vm0, %v1776_v38  ;;  %1720 = vmatmul.mubr.msk.bf16.gmra.mrb[28].mxu1 %vm262_vm0, %v1777_v39 }
  0xf5   : > { %v1563_v41 = vpop.f32.mrb[0].mxu0  ;;  %v1585_v42 = vpop.f32.mrb[0].mxu1 }
  0xf6   : > { %v322_v43 = vadd.f32 %v1563_v41, %v2048_v40  ;;  %v436_v44 = vadd.f32 %v1585_v42, %v2048_v40  ;;  %v313_v45 = vpop.f32.mrb[1].mxu0  ;;  %v427_v46 = vpop.f32.mrb[1].mxu1 }
  0xf7   : > { %v314_v47 = vadd.f32 %v2048_v40, %v313_v45  ;;  %v428_v48 = vadd.f32 %v2048_v40, %v427_v46  ;;  %v1564_v49 = vpop.f32.mrb[2].mxu0  ;;  %v1586_v50 = vpop.f32.mrb[2].mxu1 }
  0xf8   : > { %v346_v51 = vmax.f32 %v322_v43, 0.0  ;;  %v460_v52 = vmax.f32 %v436_v44, 0.0  ;;  %v325_v53 = vadd.f32 %v1564_v49, %v2048_v40  ;;  %v439_v54 = vadd.f32 %v1586_v50, %v2048_v40  ;;  %v316_v55 = vpop.f32.mrb[3].mxu0  ;;  %v430_v56 = vpop.f32.mrb[3].mxu1 }
  0xf9   : > { %v344_v57 = vmax.f32 %v314_v47, 0.0  ;;  %v458_v58 = vmax.f32 %v428_v48, 0.0  ;;  %v317_v59 = vadd.f32 %v2048_v40, %v316_v55  ;;  %v431_v60 = vadd.f32 %v2048_v40, %v430_v56 }
  0xfa   : > { %v468_v61 = vmax.f32 %v346_v51, %v460_v52  ;;  %v347_v62 = vmax.f32 %v325_v53, 0.0  ;;  %v461_v63 = vmax.f32 %v439_v54, 0.0 }
  0xfb   : > { %v466_v0 = vmax.f32 %v344_v57, %v458_v58  ;;  %v345_v1 = vmax.f32 %v317_v59, 0.0  ;;  %v459_v2 = vmax.f32 %v431_v60, 0.0 }
  0xfc   : > { %v469_v3 = vmax.f32 %v347_v62, %v461_v63 }
  0xfd   : > { %v467_v4 = vmax.f32 %v345_v1, %v459_v2  ;;  %v1567_v5 = vpop.f32.mrb[4].mxu0  ;;  %v1589_v6 = vpop.f32.mrb[4].mxu1 }
  0xfe   : > { %v338_v7 = vadd.f32 %v1567_v5, %v2048_v40  ;;  %v452_v8 = vadd.f32 %v1589_v6, %v2048_v40  ;;  %v329_v9 = vpop.f32.mrb[5].mxu0  ;;  %v443_v10 = vpop.f32.mrb[5].mxu1 }
  0xff   : > { %v330_v11 = vadd.f32 %v2048_v40, %v329_v9  ;;  %v444_v12 = vadd.f32 %v2048_v40, %v443_v10  ;;  %v1568_v13 = vpop.f32.mrb[6].mxu0  ;;  %v1590_v14 = vpop.f32.mrb[6].mxu1 }
 0x100   : > { %v350_v15 = vmax.f32 %v338_v7, 0.0  ;;  %v464_v16 = vmax.f32 %v452_v8, 0.0  ;;  %v341_v17 = vadd.f32 %v1568_v13, %v2048_v40  ;;  %v455_v18 = vadd.f32 %v1590_v14, %v2048_v40  ;;  %v332_v19 = vpop.f32.mrb[7].mxu0  ;;  %v446_v20 = vpop.f32.mrb[7].mxu1 }
 0x101   : > { %v348_v21 = vmax.f32 %v330_v11, 0.0  ;;  %v462_v22 = vmax.f32 %v444_v12, 0.0  ;;  %v333_v23 = vadd.f32 %v2048_v40, %v332_v19  ;;  %v447_v24 = vadd.f32 %v2048_v40, %v446_v20 }
 0x102   : > { %v472_v25 = vmax.f32 %v350_v15, %v464_v16  ;;  %v351_v26 = vmax.f32 %v341_v17, 0.0  ;;  %v465_v27 = vmax.f32 %v455_v18, 0.0 }
 0x103   : > { %v470_v28 = vmax.f32 %v348_v21, %v462_v22  ;;  %v349_v29 = vmax.f32 %v333_v23, 0.0  ;;  %v463_v30 = vmax.f32 %v447_v24, 0.0 }
 0x104   : > { %v473_v31 = vmax.f32 %v351_v26, %v465_v27 }
 0x105   : > { %v471_v32 = vmax.f32 %v349_v29, %v463_v30 }
 0x111   : > { %v1607_v33 = vpop.f32.mrb[8].mxu0  ;;  %v1629_v34 = vpop.f32.mrb[8].mxu1 }
 0x112   : > { %v558_v35 = vadd.f32 %v1607_v33, %v2048_v40  ;;  %v680_v36 = vadd.f32 %v1629_v34, %v2048_v40  ;;  %v549_v37 = vpop.f32.mrb[9].mxu0  ;;  %v671_v38 = vpop.f32.mrb[9].mxu1 }
 0x113   : > { %v550_v39 = vadd.f32 %v2048_v40, %v549_v37  ;;  %v672_v41 = vadd.f32 %v2048_v40, %v671_v38  ;;  %v1608_v42 = vpop.f32.mrb[10].mxu0  ;;  %v1630_v43 = vpop.f32.mrb[10].mxu1 }
 0x114   : > { %v582_v44 = vmax.f32 %v558_v35, 0.0  ;;  %v704_v45 = vmax.f32 %v680_v36, 0.0  ;;  %v561_v46 = vadd.f32 %v1608_v42, %v2048_v40  ;;  %v683_v47 = vadd.f32 %v1630_v43, %v2048_v40  ;;  %v552_v48 = vpop.f32.mrb[11].mxu0  ;;  %v674_v49 = vpop.f32.mrb[11].mxu1 }
 0x115   : > { %v580_v50 = vmax.f32 %v550_v39, 0.0  ;;  %v702_v51 = vmax.f32 %v672_v41, 0.0  ;;  %v553_v52 = vadd.f32 %v2048_v40, %v552_v48  ;;  %v675_v53 = vadd.f32 %v2048_v40, %v674_v49 }
 0x116   : > { %v590_v54 = vmax.f32 %v468_v61, %v582_v44  ;;  %v583_v55 = vmax.f32 %v561_v46, 0.0  ;;  %v705_v56 = vmax.f32 %v683_v47, 0.0 }
 0x117   : > { %v588_v57 = vmax.f32 %v466_v0, %v580_v50  ;;  %v581_v58 = vmax.f32 %v553_v52, 0.0  ;;  %v703_v1 = vmax.f32 %v675_v53, 0.0 }
 0x118   : > { %v712_v59 = vmax.f32 %v590_v54, %v704_v45  ;;  %v591_v60 = vmax.f32 %v469_v3, %v583_v55 }
 0x119   : > { %v710_v62 = vmax.f32 %v588_v57, %v702_v51  ;;  %v589_v63 = vmax.f32 %v467_v4, %v581_v58  ;;  %v1611_v2 = vpop.f32.mrb[12].mxu0  ;;  %v1633_v5 = vpop.f32.mrb[12].mxu1 }
 0x11a   : > { %v713_v6 = vmax.f32 %v591_v60, %v705_v56  ;;  %v574_v7 = vadd.f32 %v1611_v2, %v2048_v40  ;;  %v565_v8 = vpop.f32.mrb[13].mxu0  ;;  %v696_v9 = vadd.f32 %v1633_v5, %v2048_v40  ;;  %v687_v10 = vpop.f32.mrb[13].mxu1 }
 0x11b   : > { %v711_v11 = vmax.f32 %v589_v63, %v703_v1  ;;  %v566_v61 = vadd.f32 %v2048_v40, %v565_v8  ;;  %v1612_v12 = vpop.f32.mrb[14].mxu0  ;;  %v688_v0 = vadd.f32 %v2048_v40, %v687_v10  ;;  %v1634_v13 = vpop.f32.mrb[14].mxu1 }
 0x11c   : > { %v586_v3 = vmax.f32 %v574_v7, 0.0  ;;  %v577_v4 = vadd.f32 %v1612_v12, %v2048_v40  ;;  %v708_v14 = vmax.f32 %v696_v9, 0.0  ;;  %v568_v15 = vpop.f32.mrb[15].mxu0  ;;  %v699_v16 = vadd.f32 %v1634_v13, %v2048_v40  ;;  %v690_v17 = vpop.f32.mrb[15].mxu1 }
 0x11d   : > { %v584_v18 = vmax.f32 %v566_v61, 0.0  ;;  %v569_v19 = vadd.f32 %v2048_v40, %v568_v15  ;;  %v706_v20 = vmax.f32 %v688_v0, 0.0  ;;  %v691_v21 = vadd.f32 %v2048_v40, %v690_v17 }
 0x11e   : > { %v594_v22 = vmax.f32 %v472_v25, %v586_v3  ;;  %v587_v23 = vmax.f32 %v577_v4, 0.0  ;;  %v709_v24 = vmax.f32 %v699_v16, 0.0 }
 0x11f   : > { %v592_v26 = vmax.f32 %v470_v28, %v584_v18  ;;  %v585_v27 = vmax.f32 %v569_v19, 0.0  ;;  %v707_v29 = vmax.f32 %v691_v21, 0.0 }
 0x120   : > { %v595_v30 = vmax.f32 %v473_v31, %v587_v23  ;;  %v716_v33 = vmax.f32 %v594_v22, %v708_v14 }
 0x121   : > { %v593_v34 = vmax.f32 %v471_v32, %v585_v27  ;;  %v714_v35 = vmax.f32 %v592_v26, %v706_v20 }
 0x122   : > { %v717_v36 = vmax.f32 %v595_v30, %v709_v24 }
 0x123   : > { %v715_v37 = vmax.f32 %v593_v34, %v707_v29 }
 0x12d   : > { %v1651_v38 = vpop.f32.mrb[16].mxu0  ;;  %v1673_v39 = vpop.f32.mrb[16].mxu1 }
 0x12e   : > { %v802_v41 = vadd.f32 %v1651_v38, %v2048_v40  ;;  %v924_v42 = vadd.f32 %v1673_v39, %v2048_v40  ;;  %v793_v43 = vpop.f32.mrb[17].mxu0  ;;  %v915_v44 = vpop.f32.mrb[17].mxu1 }
 0x12f   : > { %v794_v25 = vadd.f32 %v2048_v40, %v793_v43  ;;  %v916_v28 = vadd.f32 %v2048_v40, %v915_v44  ;;  %v1652_v45 = vpop.f32.mrb[18].mxu0  ;;  %v1674_v46 = vpop.f32.mrb[18].mxu1 }
 0x130   : > { %v826_v31 = vmax.f32 %v802_v41, 0.0  ;;  %v948_v47 = vmax.f32 %v924_v42, 0.0  ;;  %v805_v32 = vadd.f32 %v1652_v45, %v2048_v40  ;;  %v927_v48 = vadd.f32 %v1674_v46, %v2048_v40  ;;  %v796_v49 = vpop.f32.mrb[19].mxu0  ;;  %v918_v50 = vpop.f32.mrb[19].mxu1 }
 0x131   : > { %v824_v51 = vmax.f32 %v794_v25, 0.0  ;;  %v946_v52 = vmax.f32 %v916_v28, 0.0  ;;  %v797_v53 = vadd.f32 %v2048_v40, %v796_v49  ;;  %v919_v54 = vadd.f32 %v2048_v40, %v918_v50 }
 0x132   : > { %v834_v55 = vmax.f32 %v712_v59, %v826_v31  ;;  %v827_v56 = vmax.f32 %v805_v32, 0.0  ;;  %v949_v57 = vmax.f32 %v927_v48, 0.0 }
 0x133   : > { %v832_v58 = vmax.f32 %v710_v62, %v824_v51  ;;  %v825_v60 = vmax.f32 %v797_v53, 0.0  ;;  %v947_v7 = vmax.f32 %v919_v54, 0.0 }
 0x134   : > { %v956_v63 = vmax.f32 %v834_v55, %v948_v47  ;;  %v835_v1 = vmax.f32 %v713_v6, %v827_v56 }
 0x135   : > { %v954_v2 = vmax.f32 %v832_v58, %v946_v52  ;;  %v833_v5 = vmax.f32 %v711_v11, %v825_v60  ;;  %v1655_v8 = vpop.f32.mrb[20].mxu0  ;;  %v1677_v9 = vpop.f32.mrb[20].mxu1 }
 0x136   : > { %v957_v10 = vmax.f32 %v835_v1, %v949_v57  ;;  %v818_v61 = vadd.f32 %v1655_v8, %v2048_v40  ;;  %v809_v12 = vpop.f32.mrb[21].mxu0  ;;  %v940_v0 = vadd.f32 %v1677_v9, %v2048_v40  ;;  %v931_v13 = vpop.f32.mrb[21].mxu1 }
 0x137   : > { %v955_v3 = vmax.f32 %v833_v5, %v947_v7  ;;  %v810_v59 = vadd.f32 %v2048_v40, %v809_v12  ;;  %v1656_v4 = vpop.f32.mrb[22].mxu0  ;;  %v932_v62 = vadd.f32 %v2048_v40, %v931_v13  ;;  %v1678_v14 = vpop.f32.mrb[22].mxu1 }
 0x138   : > { %v830_v6 = vmax.f32 %v818_v61, 0.0  ;;  %v821_v11 = vadd.f32 %v1656_v4, %v2048_v40  ;;  %v952_v15 = vmax.f32 %v940_v0, 0.0  ;;  %v812_v16 = vpop.f32.mrb[23].mxu0  ;;  %v943_v17 = vadd.f32 %v1678_v14, %v2048_v40  ;;  %v934_v18 = vpop.f32.mrb[23].mxu1 }
 0x139   : > { %v828_v19 = vmax.f32 %v810_v59, 0.0  ;;  %v813_v20 = vadd.f32 %v2048_v40, %v812_v16  ;;  %v950_v21 = vmax.f32 %v932_v62, 0.0  ;;  %v935_v22 = vadd.f32 %v2048_v40, %v934_v18 }
 0x13a   : > { %v838_v23 = vmax.f32 %v716_v33, %v830_v6  ;;  %v831_v24 = vmax.f32 %v821_v11, 0.0  ;;  %v953_v26 = vmax.f32 %v943_v17, 0.0 }
 0x13b   : > { %v836_v27 = vmax.f32 %v714_v35, %v828_v19  ;;  %v829_v29 = vmax.f32 %v813_v20, 0.0  ;;  %v951_v30 = vmax.f32 %v935_v22, 0.0 }
 0x13c   : > { %v839_v34 = vmax.f32 %v717_v36, %v831_v24  ;;  %v2098_v38 = vmax.f32 %v838_v23, %v952_v15 }
 0x13d   : > { %v837_v39 = vmax.f32 %v715_v37, %v829_v29  ;;  %v2100_v41 = vmax.f32 %v836_v27, %v950_v21 }
 0x13e   : > { %v2102_v42 = vmax.f32 %v839_v34, %v953_v26 }
 0x13f   : > { %v2104_v43 = vmax.f32 %v837_v39, %v951_v30 }
 0x149   : > { %v1695_v44 = vpop.f32.mrb[24].mxu0  ;;  %v1717_v25 = vpop.f32.mrb[24].mxu1 }
 0x14a   : > { %v1046_v28 = vadd.f32 %v1695_v44, %v2048_v40  ;;  %v1168_v33 = vadd.f32 %v1717_v25, %v2048_v40  ;;  %v1037_v45 = vpop.f32.mrb[25].mxu0  ;;  %v1159_v35 = vpop.f32.mrb[25].mxu1 }
 0x14b   : > { %v1038_v36 = vadd.f32 %v2048_v40, %v1037_v45  ;;  %v1160_v46 = vadd.f32 %v2048_v40, %v1159_v35  ;;  %v1696_v37 = vpop.f32.mrb[26].mxu0  ;;  %v1718_v31 = vpop.f32.mrb[26].mxu1 }
 0x14c   : > { %v1070_v47 = vmax.f32 %v1046_v28, 0.0  ;;  %v1192_v32 = vmax.f32 %v1168_v33, 0.0  ;;  %v1049_v48 = vadd.f32 %v1696_v37, %v2048_v40  ;;  %v1171_v49 = vadd.f32 %v1718_v31, %v2048_v40  ;;  %v1040_v50 = vpop.f32.mrb[27].mxu0  ;;  %v1162_v51 = vpop.f32.mrb[27].mxu1 }
 0x14d   : > { %v1068_v52 = vmax.f32 %v1038_v36, 0.0  ;;  %v1190_v53 = vmax.f32 %v1160_v46, 0.0  ;;  %v1041_v54 = vadd.f32 %v2048_v40, %v1040_v50  ;;  %v1163_v55 = vadd.f32 %v2048_v40, %v1162_v51 }
 0x14e   : > { %v1078_v56 = vmax.f32 %v956_v63, %v1070_v47  ;;  %v1071_v57 = vmax.f32 %v1049_v48, 0.0  ;;  %v1193_v7 = vmax.f32 %v1171_v49, 0.0 }
 0x14f   : > { %v1076_v58 = vmax.f32 %v954_v2, %v1068_v52  ;;  %v1069_v60 = vmax.f32 %v1041_v54, 0.0  ;;  %v1191_v61 = vmax.f32 %v1163_v55, 0.0 }
 0x150   : > { %v1200_v1 = vmax.f32 %v1078_v56, %v1192_v32  ;;  %v1079_v5 = vmax.f32 %v957_v10, %v1071_v57 }
 0x151   : > { %v1198_v8 = vmax.f32 %v1076_v58, %v1190_v53  ;;  %v1077_v9 = vmax.f32 %v955_v3, %v1069_v60  ;;  %v1699_v12 = vpop.f32.mrb[28].mxu0  ;;  %v1721_v0 = vpop.f32.mrb[28].mxu1 }
 0x152   : > { %v1453_v63 = vpack.c.bf16 %v1200_v1, %v1200_v1  ;;  %v1201_v13 = vmax.f32 %v1079_v5, %v1193_v7  ;;  %v1062_v2 = vadd.f32 %v1699_v12, %v2048_v40  ;;  %v1184_v59 = vadd.f32 %v1721_v0, %v2048_v40  ;;  %v1053_v10 = vpop.f32.mrb[29].mxu0  ;;  %v1175_v4 = vpop.f32.mrb[29].mxu1 }
 0x153   : > { %v1451_v62 = vpack.c.bf16 %v1198_v8, %v1198_v8  ;;  %v1199_v14 = vmax.f32 %v1077_v9, %v1191_v61  ;;  %v1054_v6 = vadd.f32 %v2048_v40, %v1053_v10  ;;  %v1176_v3 = vadd.f32 %v2048_v40, %v1175_v4  ;;  %v1700_v11 = vpop.f32.mrb[30].mxu0  ;;  %v1722_v15 = vpop.f32.mrb[30].mxu1 }
 0x154   : > { %1241 = vst.msk [vmem:[%s2118_s10 + $0x8] sm:$0xf] %vm1238_vm2, %v1453_v63  ;;  %v1454_v16 = vpack.c.bf16 %v1201_v13, %v1201_v13  ;;  %v1074_v17 = vmax.f32 %v1062_v2, 0.0  ;;  %v1196_v18 = vmax.f32 %v1184_v59, 0.0  ;;  %v1065_v19 = vadd.f32 %v1700_v11, %v2048_v40  ;;  %v1056_v20 = vpop.f32.mrb[31].mxu0  ;;  %v1178_v21 = vpop.f32.mrb[31].mxu1 }
 0x155   : > { %1239 = vst.msk [vmem:[%s2118_s10] sm:$0xf] %vm1238_vm2, %v1451_v62  ;;  %v1452_v22 = vpack.c.bf16 %v1199_v14, %v1199_v14  ;;  %v1072_v23 = vmax.f32 %v1054_v6, 0.0  ;;  %v1194_v24 = vmax.f32 %v1176_v3, 0.0  ;;  %v1187_v26 = vadd.f32 %v1722_v15, %v2048_v40 }
 0x156   : > { %1242 = vst.msk [vmem:[%s2118_s10 + $0xc] sm:$0xf] %vm1238_vm2, %v1454_v16  ;;  %v1082_v27 = vmax.f32 %v2098_v38, %v1074_v17  ;;  %v1075_v29 = vmax.f32 %v1065_v19, 0.0  ;;  %v1057_v30 = vadd.f32 %v2048_v40, %v1056_v20  ;;  %v1179_v34 = vadd.f32 %v2048_v40, %v1178_v21 }
 0x157   : > { %1240 = vst.msk [vmem:[%s2118_s10 + $0x4] sm:$0xf] %vm1238_vm2, %v1452_v22  ;;  %v1080_v39 = vmax.f32 %v2100_v41, %v1072_v23  ;;  %v1197_v28 = vmax.f32 %v1187_v26, 0.0 }
 0x158   : > { %v1204_v44 = vmax.f32 %v1082_v27, %v1196_v18  ;;  %v1083_v25 = vmax.f32 %v2102_v42, %v1075_v29  ;;  %v1073_v33 = vmax.f32 %v1057_v30, 0.0  ;;  %v1195_v46 = vmax.f32 %v1179_v34, 0.0 }
 0x159   : > { %v1202_v45 = vmax.f32 %v1080_v39, %v1194_v24 }
 0x15a   : > { %v1457_v38 = vpack.c.bf16 %v1204_v44, %v1204_v44  ;;  %v1205_v35 = vmax.f32 %v1083_v25, %v1197_v28  ;;  %v1081_v36 = vmax.f32 %v2104_v43, %v1073_v33 }
 0x15b   : > { %v1455_v37 = vpack.c.bf16 %v1202_v45, %v1202_v45 }
 0x15c   : > { %1245 = vst.msk [vmem:[%s2118_s10 + $0x18] sm:$0xf] %vm1238_vm2, %v1457_v38  ;;  %v1458_v40 = vpack.c.bf16 %v1205_v35, %v1205_v35  ;;  %v1203_v31 = vmax.f32 %v1081_v36, %v1195_v46 }
 0x15d   : > { %1243 = vst.msk [vmem:[%s2118_s10 + $0x10] sm:$0xf] %vm1238_vm2, %v1455_v37 }
 0x15e   : > { %1246 = vst.msk [vmem:[%s2118_s10 + $0x1c] sm:$0xf] %vm1238_vm2, %v1458_v40  ;;  %v1456_v41 = vpack.c.bf16 %v1203_v31, %v1203_v31 }
 0x160   : > { %1244 = vst.msk [vmem:[%s2118_s10 + $0x14] sm:$0xf] %vm1238_vm2, %v1456_v41 }
 0x161 PF: > { %s13_s12 = sadd.s32 1, %s1784_s12  }
 0x162   : > { %p10_p4 = scmp.ge.s32.totalorder %s13_s12, 4  }
 0x164   :  { %12 = sbr.rel (!%p10_p4) target bundleno = 1 (0x1), region = 69 }

// kernel: baseline_3dconvnet_forward.4
= control target key start
LH: loop header
LB: loop body
LE: loop exit
PB: predicated region body
PF: predicated region fallthrough
CT: control target
= control target key end

     0   :  { %s1555_s12 = smov 0   ;;  %s1815_s0 = inlined_call_operand.vmem [shape: bf16[2,64,864], index: 0, kind: input, shape index: {}]   ;;  %s1816_s1 = inlined_call_operand.vmem [shape: bf16[864,64], index: 1, kind: input, shape index: {}]   ;;  %s1817_s2 = inlined_call_operand.vmem [shape: f32[1,64], index: 2, kind: input, shape index: {}]   ;;  %s1818_s3 = inlined_call_operand.vmem [shape: bf16[2,64,64], index: 3, kind: output, shape index: {}]  }
   0x1 LB: > { %s1160_s13 = sadd.s32 4294967295, %s1533_s12   ;;  %p1164_p0 = scmp.ge.s32.totalorder %s1533_s12, 1  ;;  %s1533_s12 = sphi %s1555_s12, %s13_s12  }
   0x2   : > { %p137_p1 = scmp.lt.s32.totalorder %s1533_s12, 3 }
   0x4   : > { %p138_p2 = pnand %p1164_p0, %p137_p1 }
   0x5   : > { %v1433_v0 = vld [vmem:[%s1816_s1 + $0x40] sm:$0xff] (!%p138_p2)   ;;  %v1437_v4 = vld [vmem:[%s1816_s1 + $0x48] sm:$0xff] (!%p138_p2)   ;;  %v1441_v8 = vld [vmem:[%s1816_s1 + $0x50] sm:$0xff] (!%p138_p2)   ;;  %p161_p3 = scmp.lt.s32.totalorder (!%p138_p2), %s1160_s13, 1  ;;  %vm783_vm0 = vcmask (!%p138_p2), 785408   ;;  %vm1096_vm1 = vcmask (!%p138_p2), 519168  }
   0x6   : > { %141 = sbr.rel (%p138_p2) target bundleno = 320 (0x140), region = 32  ;;  %v1434_v1 = vld [vmem:[%s1816_s1] sm:$0xff] (!%p138_p2)   ;;  %1274 = vmatprep.subr.bf16.mxu0 (!%p138_p2), %v1433_v0  ;;  %v1438_v5 = vld [vmem:[%s1816_s1 + $0x8] sm:$0xff] (!%p138_p2)   ;;  %v1442_v9 = vld [vmem:[%s1816_s1 + $0x10] sm:$0xff] (!%p138_p2)  }
   0x7   : > { %v1435_v2 = vld [vmem:[%s1816_s1 + $0xc0] sm:$0xff] (!%p138_p2)   ;;  %1275 = vmatpush3.bf16.msra.mxu0 (!%p138_p2), %v1434_v1  ;;  %v1439_v6 = vld [vmem:[%s1816_s1 + $0xc8] sm:$0xff] (!%p138_p2)   ;;  %v1443_v10 = vld [vmem:[%s1816_s1 + $0xd0] sm:$0xff] (!%p138_p2)  }
   0x8   : > { %v1436_v3 = vld [vmem:[%s1816_s1 + $0x80] sm:$0xff] (!%p138_p2)   ;;  %1314 = vmatprep.subr.bf16.mxu1 (!%p138_p2), %v1435_v2  ;;  %1276 = vmatprep.subr.bf16.mxu0 (!%p138_p2), %v1437_v4  ;;  %v1440_v7 = vld [vmem:[%s1816_s1 + $0x88] sm:$0xff] (!%p138_p2)   ;;  %v1444_v11 = vld [vmem:[%s1816_s1 + $0x90] sm:$0xff] (!%p138_p2)  }
   0x9   : > { %1315 = vmatpush3.bf16.msra.mxu1 (!%p138_p2), %v1436_v3  ;;  %v1445_v12 = vld [vmem:[%s1816_s1 + $0x58] sm:$0xff] (!%p138_p2)   ;;  %v1449_v16 = vld [vmem:[%s1816_s1 + $0x60] sm:$0xff] (!%p138_p2)   ;;  %v1453_v20 = vld [vmem:[%s1816_s1 + $0x68] sm:$0xff] (!%p138_p2)  }
   0xa   : > { %1316 = vmatprep.subr.bf16.mxu1 (!%p138_p2), %v1439_v6  ;;  %v1446_v13 = vld [vmem:[%s1816_s1 + $0x18] sm:$0xff] (!%p138_p2)   ;;  %v1450_v17 = vld [vmem:[%s1816_s1 + $0x20] sm:$0xff] (!%p138_p2)   ;;  %v1454_v21 = vld [vmem:[%s1816_s1 + $0x28] sm:$0xff] (!%p138_p2)  }
   0xb   : > { %1277 = vmatpush3.bf16.msra.mxu0 (!%p138_p2), %v1438_v5  ;;  %v1447_v14 = vld [vmem:[%s1816_s1 + $0xd8] sm:$0xff] (!%p138_p2)   ;;  %v1451_v18 = vld [vmem:[%s1816_s1 + $0xe0] sm:$0xff] (!%p138_p2)   ;;  %v1455_v22 = vld [vmem:[%s1816_s1 + $0xe8] sm:$0xff] (!%p138_p2)  }
   0xc   : > { %1278 = vmatprep.subr.bf16.mxu0 (!%p138_p2), %v1441_v8  ;;  %v1448_v15 = vld [vmem:[%s1816_s1 + $0x98] sm:$0xff] (!%p138_p2)   ;;  %v1452_v19 = vld [vmem:[%s1816_s1 + $0xa0] sm:$0xff] (!%p138_p2)   ;;  %v1456_v23 = vld [vmem:[%s1816_s1 + $0xa8] sm:$0xff] (!%p138_p2)  }
   0xd   : > { %1317 = vmatpush3.bf16.msra.mxu1 %v1440_v7  ;;  %s1820_s13 = smov (!%p161_p3, %s1160_s13), 1  ;;  %v1457_v24 = vld [vmem:[%s1816_s1 + $0x70] sm:$0xff]   ;;  %v1461_v28 = vld [vmem:[%s1816_s1 + $0x78] sm:$0xff]   ;;  %v1468_v34 = vld [vmem:[%s1816_s1 + $0x140] sm:$0xff]  }
   0xe   : > { %1318 = vmatprep.subr.bf16.mxu1 %v1443_v10  ;;  %s1424_s14 = smul.u32 224, %s1820_s13  ;;  %v1458_v25 = vld [vmem:[%s1816_s1 + $0x30] sm:$0xff]   ;;  %v1462_v29 = vld [vmem:[%s1816_s1 + $0x38] sm:$0xff]   ;;  %v1472_v37 = vld [vmem:[%s1816_s1 + $0x100] sm:$0xff]  }
   0xf   : > { %1279 = vmatpush3.bf16.msra.mxu0 %v1442_v9  ;;  %v1459_v26 = vld [vmem:[%s1816_s1 + $0xf0] sm:$0xff]   ;;  %v1463_v30 = vld [vmem:[%s1816_s1 + $0xf8] sm:$0xff]   ;;  %v1473_v38 = vld [vmem:[%s1816_s1 + $0x148] sm:$0xff]  }
  0x10   : > { %1280 = vmatprep.subr.bf16.mxu0 %v1445_v12  ;;  %v1460_v27 = vld [vmem:[%s1816_s1 + $0xb0] sm:$0xff]   ;;  %s1660_s25 = scalar_lea.vmem %s1815_s0, %s1424_s14  ;;  %v1467_v33 = vld [vmem:[%s1816_s1 + $0xb8] sm:$0xff]   ;;  %v1474_v39 = vld [vmem:[%s1816_s1 + $0x108] sm:$0xff]  }
  0x11   : > { %1319 = vmatpush3.bf16.msra.mxu1 %v1444_v11  ;;  %v1464_v31 = vld [vmem:[%s1660_s25] ss:$28 sps:$4 sm:$0xff]   ;;  %v1469_v35 = vld [vmem:[%s1660_s25 + $0x8] ss:$28 sps:$4 sm:$0xff]   ;;  %v1477_v41 = vld [vmem:[%s1660_s25 + $0x38] ss:$28 sps:$4 sm:$0xff]  }
  0x12   : > { %1320 = vmatprep.subr.bf16.mxu1 %v1447_v14  ;;  %v1466_v32 = vld [vmem:[%s1660_s25 + $0x4] ss:$28 sps:$4 sm:$0xff]   ;;  %v1471_v36 = vld [vmem:[%s1660_s25 + $0xc] ss:$28 sps:$4 sm:$0xff]   ;;  %v1475_v40 = vld [vmem:[%s1660_s25 + $0x3c] ss:$28 sps:$4 sm:$0xff]  }
  0x13   : > { %1281 = vmatpush3.bf16.msra.mxu0 %v1446_v13  ;;  %828 = vmatprep.mubr.bf16.mxu0 %v1466_v32  ;;  %v1478_v42 = vld [vmem:[%s1816_s1 + $0x150] sm:$0xff]   ;;  %v1479_v43 = vld [vmem:[%s1660_s25 + $0x44] ss:$28 sps:$4 sm:$0xff]   ;;  %v1483_v46 = vld [vmem:[%s1816_s1 + $0x158] sm:$0xff]  }
  0x14   : > { %1282 = vmatprep.subr.bf16.mxu0 %v1449_v16  ;;  %893 = vmatprep.mubr.bf16.mxu1 %v1471_v36  ;;  %v1481_v44 = vld [vmem:[%s1816_s1 + $0x110] sm:$0xff]   ;;  %v1482_v45 = vld [vmem:[%s1660_s25 + $0x40] ss:$28 sps:$4 sm:$0xff]   ;;  %v1490_v52 = vld [vmem:[%s1816_s1 + $0x188] sm:$0xff]  }
  0x15   : > { %1321 = vmatpush3.bf16.msra.mxu1 %v1448_v15  ;;  %v1484_v47 = vld [vmem:[%s1816_s1 + $0x180] sm:$0xff]   ;;  %v1485_v48 = vld [vmem:[%s1816_s1 + $0x118] sm:$0xff]   ;;  %v1486_v49 = vld [vmem:[%s1660_s25 + $0x74] ss:$28 sps:$4 sm:$0xff]  }
  0x16   : > { %1322 = vmatprep.subr.bf16.mxu1 %v1451_v18  ;;  %v1488_v50 = vld [vmem:[%s1660_s25 + $0x70] ss:$28 sps:$4 sm:$0xff]   ;;  %v1489_v51 = vld [vmem:[%s1816_s1 + $0x160] sm:$0xff]   ;;  %v1491_v53 = vld [vmem:[%s1660_s25 + $0x7c] ss:$28 sps:$4 sm:$0xff]  }
  0x17   : > { %1283 = vmatpush3.bf16.msra.mxu0 %v1450_v17  ;;  %v1493_v54 = vld [vmem:[%s1816_s1 + $0x120] sm:$0xff]   ;;  %v1494_v55 = vld [vmem:[%s1660_s25 + $0x78] ss:$28 sps:$4 sm:$0xff]   ;;  %v1495_v56 = vld [vmem:[%s1816_s1 + $0x168] sm:$0xff]  }
  0x18   : > { %1284 = vmatprep.subr.bf16.mxu0 %v1453_v20  ;;  %v1496_v57 = vld [vmem:[%s1816_s1 + $0x190] sm:$0xff]   ;;  %v1497_v58 = vld [vmem:[%s1816_s1 + $0x128] sm:$0xff]   ;;  %v1502_v62 = vld [vmem:[%s1816_s1 + $0x198] sm:$0xff]  }
  0x19   : > { %1323 = vmatpush3.bf16.msra.mxu1 %v1452_v19  ;;  %v1498_v59 = vld [vmem:[%s1660_s25 + $0xac] ss:$28 sps:$4 sm:$0xff]   ;;  %v1501_v61 = vld [vmem:[%s1816_s1 + $0x170] sm:$0xff]   ;;  %v1507_v2 = vld [vmem:[%s1816_s1 + $0x178] sm:$0xff]  }
  0x1a   : > { %1324 = vmatprep.subr.bf16.mxu1 %v1455_v22  ;;  %v1500_v60 = vld [vmem:[%s1660_s25 + $0xa8] ss:$28 sps:$4 sm:$0xff]   ;;  %v1503_v63 = vld [vmem:[%s1660_s25 + $0xb4] ss:$28 sps:$4 sm:$0xff]   ;;  %v1509_v4 = vld [vmem:[%s1816_s1 + $0x138] sm:$0xff]  }
  0x1b   : > { %1285 = vmatpush3.bf16.msra.mxu0 %v1454_v21  ;;  %v1505_v0 = vld [vmem:[%s1816_s1 + $0x130] sm:$0xff]   ;;  %v1508_v3 = vld [vmem:[%s1816_s1 + $0x1a0] sm:$0xff]   ;;  %v1513_v7 = vld [vmem:[%s1816_s1 + $0x1a8] sm:$0xff]  }
  0x1c   : > { %1286 = vmatprep.subr.bf16.mxu0 %v1457_v24  ;;  %v1506_v1 = vld [vmem:[%s1660_s25 + $0xb0] ss:$28 sps:$4 sm:$0xff]   ;;  %v1514_v8 = vld [vmem:[%s1660_s25 + $0x18] ss:$28 sps:$4 sm:$0xff]   ;;  %v1522_v11 = vld [vmem:[%s1660_s25 + $0x88] ss:$28 sps:$4 sm:$0xff]  }
  0x1d   : > { %1325 = vmatpush3.bf16.msra.mxu1 %v1456_v23  ;;  %v1510_v5 = vld [vmem:[%s1660_s25 + $0x10] ss:$28 sps:$4 sm:$0xff]   ;;  %v1518_v12 = vld [vmem:[%s1660_s25 + $0x48] ss:$28 sps:$4 sm:$0xff]   ;;  %v1523_v14 = vld [vmem:[%s1660_s25 + $0xc0] ss:$28 sps:$4 sm:$0xff]  }
  0x1e   : > { %1326 = vmatprep.subr.bf16.mxu1 %v1459_v26  ;;  %v1512_v6 = vld [vmem:[%s1660_s25 + $0x14] ss:$28 sps:$4 sm:$0xff]   ;;  %v1516_v10 = vld [vmem:[%s1660_s25 + $0x4c] ss:$28 sps:$4 sm:$0xff]   ;;  %v1519_v13 = vld [vmem:[%s1660_s25 + $0x84] ss:$28 sps:$4 sm:$0xff]  }
  0x1f   : > { %1287 = vmatpush3.bf16.msra.mxu0 %v1458_v25  ;;  %v1515_v9 = vld [vmem:[%s1660_s25 + $0x50] ss:$28 sps:$4 sm:$0xff]   ;;  %v1521_v15 = vld [vmem:[%s1660_s25 + $0x80] ss:$28 sps:$4 sm:$0xff]   ;;  %v1526_v17 = vld [vmem:[%s1660_s25 + $0xb8] ss:$28 sps:$4 sm:$0xff]  }
  0x20   : > { %1288 = vmatprep.subr.bf16.mxu0 %v1461_v28  ;;  %v1524_v16 = vld [vmem:[%s1660_s25 + $0xbc] ss:$28 sps:$4 sm:$0xff]   ;;  %v1168_v19 = vld [vmem:[%s1817_s2] ss:$0 sm:$0xff]  ;;  %s1265_s25 = sshll.u32 %s1820_s13, 5 }
  0x21   : > { %1327 = vmatpush3.bf16.msra.mxu1 %v1460_v27  ;;  %s1788_s5 = scalar_lea.vmem %s1818_s3, %s1265_s25 }
  0x22   : > { %1328 = vmatprep.subr.bf16.mxu1 %v1463_v30 }
  0x23   : > { %1289 = vmatpush3.bf16.msra.mxu0 %v1462_v29 }
  0x24   : > { %1354 = vmatprep.subr.bf16.mxu0 %v1468_v34 }
  0x25   : > { %1329 = vmatpush3.bf16.msra.mxu1 %v1467_v33 }
  0x26   : > { %829 = vmatmul.mubr.bf16.vlgmr.msra.gmra.mrb[0].mxu0 %v1464_v31  ;;  %1404 = vmatprep.subr.bf16.mxu1 %v1484_v47 }
  0x27   : > { %1355 = vmatpush3.bf16.msra.mxu0 %v1472_v37  ;;  %836 = vmatprep.mubr.bf16.mxu0 %v1475_v40 }
  0x28   : > { %894 = vmatmul.mubr.bf16.vlgmr.msra.gmra.mrb[0].mxu1 %v1469_v35  ;;  %1356 = vmatprep.subr.bf16.mxu0 %v1473_v38 }
  0x29   : > { %901 = vmatprep.mubr.bf16.mxu1 %v1479_v43  ;;  %1405 = vmatpush3.bf16.msra.mxu1 %v1484_v47 }
  0x2a   : > { %1406 = vmatprep.subr.bf16.mxu1 %v1490_v52 }
  0x2b   : > { %1357 = vmatpush3.bf16.msra.mxu0 %v1474_v39 }
  0x2c   : > { %1358 = vmatprep.subr.bf16.mxu0 %v1478_v42 }
  0x2d   : > { %1407 = vmatpush3.bf16.msra.mxu1 %v1490_v52 }
  0x2e   : > { %837 = vmatmul.mubr.bf16.gmra.mrb[4].mxu0 %v1477_v41  ;;  %1408 = vmatprep.subr.bf16.mxu1 %v1496_v57 }
  0x2f   : > { %1359 = vmatpush3.bf16.msra.mxu0 %v1481_v44  ;;  %844 = vmatprep.mubr.bf16.mxu0 %v1486_v49 }
  0x30   : > { %902 = vmatmul.mubr.bf16.gmra.mrb[4].mxu1 %v1482_v45  ;;  %1360 = vmatprep.subr.bf16.mxu0 %v1483_v46 }
  0x31   : > { %909 = vmatprep.mubr.bf16.mxu1 %v1491_v53  ;;  %1409 = vmatpush3.bf16.msra.mxu1 %v1496_v57 }
  0x32   : > { %1410 = vmatprep.subr.bf16.mxu1 %v1502_v62 }
  0x33   : > { %1361 = vmatpush3.bf16.msra.mxu0 %v1485_v48 }
  0x34   : > { %1362 = vmatprep.subr.bf16.mxu0 %v1489_v51 }
  0x35   : > { %1411 = vmatpush3.bf16.msra.mxu1 %v1502_v62 }
  0x36   : > { %845 = vmatmul.mubr.bf16.gmra.mrb[8].mxu0 %v1488_v50  ;;  %1412 = vmatprep.subr.bf16.mxu1 %v1508_v3 }
  0x37   : > { %1363 = vmatpush3.bf16.msra.mxu0 %v1493_v54  ;;  %852 = vmatprep.mubr.bf16.mxu0 %v1498_v59 }
  0x38   : > { %910 = vmatmul.mubr.bf16.gmra.mrb[8].mxu1 %v1494_v55  ;;  %1364 = vmatprep.subr.bf16.mxu0 %v1495_v56 }
  0x39   : > { %917 = vmatprep.mubr.bf16.mxu1 %v1503_v63  ;;  %1413 = vmatpush3.bf16.msra.mxu1 %v1508_v3 }
  0x3a   : > { %1414 = vmatprep.subr.bf16.mxu1 %v1513_v7 }
  0x3b   : > { %1365 = vmatpush3.bf16.msra.mxu0 %v1497_v58 }
  0x3c   : > { %1366 = vmatprep.subr.bf16.mxu0 %v1501_v61 }
  0x3d   : > { %1415 = vmatpush3.bf16.msra.mxu1 %v1513_v7 }
  0x3e   : > { %853 = vmatmul.mubr.bf16.gmra.mrb[12].mxu0 %v1500_v60 }
  0x3f   : > { %1367 = vmatpush3.bf16.msra.mxu0 %v1505_v0  ;;  %958 = vmatprep.mubr.bf16.mxu0 %v1512_v6 }
  0x40   : > { %918 = vmatmul.mubr.bf16.gmra.mrb[12].mxu1 %v1506_v1  ;;  %1368 = vmatprep.subr.bf16.mxu0 %v1507_v2 }
  0x41   : > { %1416 = vmatprep.mubr.msk.bf16.mxu1 %vm783_vm0, %v1514_v8 }
  0x43   : > { %1369 = vmatpush3.bf16.msra.mxu0 %v1509_v4 }
  0x46   : > { %959 = vmatmul.mubr.bf16.vlgmr.msra.gmra.mrb[16].mxu0 %v1510_v5 }
  0x47   : > { %966 = vmatprep.mubr.bf16.mxu0 %v1516_v10 }
  0x48   : > { %1417 = vmatmul.mubr.msk.bf16.vlgmr.msra.gmra.mrb[16].mxu1 %vm783_vm0, %v1515_v9 }
  0x49   : > { %1420 = vmatprep.mubr.msk.bf16.mxu1 %vm783_vm0, %v1522_v11 }
  0x4e   : > { %967 = vmatmul.mubr.bf16.gmra.mrb[20].mxu0 %v1518_v12 }
  0x4f   : > { %974 = vmatprep.mubr.bf16.mxu0 %v1519_v13 }
  0x50   : > { %1421 = vmatmul.mubr.msk.bf16.gmra.mrb[20].mxu1 %vm783_vm0, %v1523_v14 }
  0x56   : > { %975 = vmatmul.mubr.bf16.gmra.mrb[24].mxu0 %v1521_v15 }
  0x57   : > { %982 = vmatprep.mubr.bf16.mxu0 %v1524_v16 }
  0x5e   : > { %983 = vmatmul.mubr.bf16.gmra.mrb[28].mxu0 %v1526_v17 }
  0xf9   : > { %v1290_v18 = vpop.f32.mrb[0].mxu0 }
  0xfa   : > { %v1291_v20 = vpop.f32.mrb[1].mxu0 }
  0xfb   : > { %v1292_v21 = vadd.f32 %v1291_v20, %v1290_v18  ;;  %v1293_v22 = vpop.f32.mrb[2].mxu0  ;;  %v1330_v23 = vpop.f32.mrb[0].mxu1 }
  0xfc   : > { %v1294_v24 = vpop.f32.mrb[3].mxu0  ;;  %v1331_v27 = vpop.f32.mrb[1].mxu1 }
  0xfd   : > { %v831_v25 = vadd.f32 %v1292_v21, %v1168_v19  ;;  %v1295_v26 = vadd.f32 %v1294_v24, %v1293_v22  ;;  %v1332_v28 = vadd.f32 %v1331_v27, %v1330_v23  ;;  %v1333_v29 = vpop.f32.mrb[2].mxu1 }
  0xfe   : > { %v1334_v31 = vpop.f32.mrb[3].mxu1 }
  0xff   : > { %v834_v30 = vadd.f32 %v1295_v26, %v1168_v19  ;;  %v896_v32 = vadd.f32 %v1332_v28, %v831_v25  ;;  %v1335_v33 = vadd.f32 %v1334_v31, %v1333_v29 }
 0x101   : > { %v1296_v34 = vpop.f32.mrb[4].mxu0  ;;  %v899_v35 = vadd.f32 %v1335_v33, %v834_v30 }
 0x102   : > { %v1297_v36 = vpop.f32.mrb[5].mxu0 }
 0x103   : > { %v1298_v37 = vadd.f32 %v1297_v36, %v1296_v34  ;;  %v1299_v38 = vpop.f32.mrb[6].mxu0  ;;  %v1336_v39 = vpop.f32.mrb[4].mxu1 }
 0x104   : > { %v1300_v40 = vpop.f32.mrb[7].mxu0  ;;  %v1337_v43 = vpop.f32.mrb[5].mxu1 }
 0x105   : > { %v839_v41 = vadd.f32 %v1298_v37, %v1168_v19  ;;  %v1301_v42 = vadd.f32 %v1300_v40, %v1299_v38  ;;  %v1338_v44 = vadd.f32 %v1337_v43, %v1336_v39  ;;  %v1339_v45 = vpop.f32.mrb[6].mxu1 }
 0x106   : > { %v1340_v47 = vpop.f32.mrb[7].mxu1 }
 0x107   : > { %v842_v46 = vadd.f32 %v1301_v42, %v1168_v19  ;;  %v1772_v48 = vadd.f32 %v1338_v44, %v839_v41  ;;  %v1341_v49 = vadd.f32 %v1340_v47, %v1339_v45 }
 0x109   : > { %v1302_v50 = vpop.f32.mrb[8].mxu0  ;;  %v1774_v51 = vadd.f32 %v1341_v49, %v842_v46 }
 0x10a   : > { %v1303_v52 = vpop.f32.mrb[9].mxu0 }
 0x10b   : > { %v1304_v53 = vadd.f32 %v1303_v52, %v1302_v50  ;;  %v1305_v54 = vpop.f32.mrb[10].mxu0  ;;  %v1342_v55 = vpop.f32.mrb[8].mxu1 }
 0x10c   : > { %v1306_v56 = vpop.f32.mrb[11].mxu0  ;;  %v1343_v59 = vpop.f32.mrb[9].mxu1 }
 0x10d   : > { %v847_v57 = vadd.f32 %v1304_v53, %v1168_v19  ;;  %v1307_v58 = vadd.f32 %v1306_v56, %v1305_v54  ;;  %v1344_v60 = vadd.f32 %v1343_v59, %v1342_v55  ;;  %v1345_v61 = vpop.f32.mrb[10].mxu1 }
 0x10e   : > { %v1346_v63 = vpop.f32.mrb[11].mxu1 }
 0x10f   : > { %v850_v62 = vadd.f32 %v1307_v58, %v1168_v19  ;;  %v1776_v0 = vadd.f32 %v1344_v60, %v847_v57  ;;  %v1347_v1 = vadd.f32 %v1346_v63, %v1345_v61 }
 0x111   : > { %v1308_v2 = vpop.f32.mrb[12].mxu0  ;;  %v1778_v3 = vadd.f32 %v1347_v1, %v850_v62 }
 0x112   : > { %v1309_v4 = vpop.f32.mrb[13].mxu0 }
 0x113   : > { %v1310_v5 = vadd.f32 %v1309_v4, %v1308_v2  ;;  %v1311_v6 = vpop.f32.mrb[14].mxu0  ;;  %v1348_v7 = vpop.f32.mrb[12].mxu1 }
 0x114   : > { %v1312_v8 = vpop.f32.mrb[15].mxu0  ;;  %v1349_v11 = vpop.f32.mrb[13].mxu1 }
 0x115   : > { %v855_v9 = vadd.f32 %v1310_v5, %v1168_v19  ;;  %v1313_v10 = vadd.f32 %v1312_v8, %v1311_v6  ;;  %v1350_v12 = vadd.f32 %v1349_v11, %v1348_v7  ;;  %v1351_v13 = vpop.f32.mrb[14].mxu1 }
 0x116   : > { %v1352_v15 = vpop.f32.mrb[15].mxu1 }
 0x117   : > { %v858_v14 = vadd.f32 %v1313_v10, %v1168_v19  ;;  %v1780_v16 = vadd.f32 %v1350_v12, %v855_v9  ;;  %v1353_v17 = vadd.f32 %v1352_v15, %v1351_v13 }
 0x119   : > { %v1782_v18 = vadd.f32 %v1353_v17, %v858_v14  ;;  %v1370_v20 = vpop.f32.mrb[16].mxu0 }
 0x11a   : > { %v1371_v21 = vpop.f32.mrb[17].mxu0 }
 0x11b   : > { %v1372_v22 = vadd.f32 %v1371_v21, %v1370_v20  ;;  %v1373_v23 = vpop.f32.mrb[18].mxu0  ;;  %v1418_v25 = vpop.f32.mrb[16].mxu1 }
 0x11c   : > { %v1374_v24 = vpop.f32.mrb[19].mxu0  ;;  %v1025_v28 = vpop.f32.mrb[17].mxu1 }
 0x11d   : > { %v1375_v26 = vadd.f32 %v1374_v24, %v1373_v23  ;;  %v961_v27 = vadd.f32 %v1372_v22, %v896_v32  ;;  %v1419_v29 = vpop.f32.mrb[18].mxu1 }
 0x11e   : > { %v1028_v19 = vpop.f32.mrb[19].mxu1 }
 0x11f   : > { %v1026_v30 = vadd.f32 %v1025_v28, %v961_v27  ;;  %v964_v31 = vadd.f32 %v1375_v26, %v899_v35 }
 0x121   : > { %v1056_v33 = vmax.f32 %v1026_v30, 0.0  ;;  %v1029_v34 = vadd.f32 %v1028_v19, %v964_v31  ;;  %v1376_v36 = vpop.f32.mrb[20].mxu0 }
 0x122   : > { %v1377_v37 = vpop.f32.mrb[21].mxu0 }
 0x123   : > { %v1266_v38 = vpack.c.bf16 %v1056_v33, %v1056_v33  ;;  %v1057_v32 = vmax.f32 %v1029_v34, 0.0  ;;  %v1378_v39 = vadd.f32 %v1377_v37, %v1376_v36  ;;  %v1379_v40 = vpop.f32.mrb[22].mxu0  ;;  %v1422_v42 = vpop.f32.mrb[20].mxu1 }
 0x124   : > { %v1380_v41 = vpop.f32.mrb[23].mxu0  ;;  %v1041_v45 = vpop.f32.mrb[21].mxu1 }
 0x125   : > { %1097 = vst.msk [vmem:[%s1788_s5] sm:$0xf] %vm1096_vm1, %v1266_v38  ;;  %v1267_v35 = vpack.c.bf16 %v1057_v32, %v1057_v32  ;;  %v969_v43 = vadd.f32 %v1378_v39, %v1772_v48  ;;  %v1381_v44 = vadd.f32 %v1380_v41, %v1379_v40  ;;  %v1423_v46 = vpop.f32.mrb[22].mxu1 }
 0x126   : > { %v1044_v50 = vpop.f32.mrb[23].mxu1 }
 0x127   : > { %1098 = vst.msk [vmem:[%s1788_s5 + $0x4] sm:$0xf] %vm1096_vm1, %v1267_v35  ;;  %v1034_v47 = vadd.f32 %v1418_v25, %v969_v43  ;;  %v972_v49 = vadd.f32 %v1381_v44, %v1774_v51 }
 0x129   : > { %v1058_v52 = vmax.f32 %v1034_v47, 0.0  ;;  %v1037_v53 = vadd.f32 %v1419_v29, %v972_v49  ;;  %v1382_v54 = vpop.f32.mrb[24].mxu0 }
 0x12a   : > { %v1383_v55 = vpop.f32.mrb[25].mxu0 }
 0x12b   : > { %v1268_v56 = vpack.c.bf16 %v1058_v52, %v1058_v52  ;;  %v1059_v57 = vmax.f32 %v1037_v53, 0.0  ;;  %v1384_v58 = vadd.f32 %v1383_v55, %v1382_v54  ;;  %v1385_v59 = vpop.f32.mrb[26].mxu0 }
 0x12c   : > { %v1386_v48 = vpop.f32.mrb[27].mxu0 }
 0x12d   : > { %1099 = vst.msk [vmem:[%s1788_s5 + $0x8] sm:$0xf] %vm1096_vm1, %v1268_v56  ;;  %v1269_v60 = vpack.c.bf16 %v1059_v57, %v1059_v57  ;;  %v1387_v61 = vadd.f32 %v1386_v48, %v1385_v59  ;;  %v977_v62 = vadd.f32 %v1384_v58, %v1776_v0 }
 0x12f   : > { %1100 = vst.msk [vmem:[%s1788_s5 + $0xc] sm:$0xf] %vm1096_vm1, %v1269_v60  ;;  %v1042_v51 = vadd.f32 %v1041_v45, %v977_v62  ;;  %v980_v63 = vadd.f32 %v1387_v61, %v1778_v3 }
 0x131   : > { %v1060_v1 = vmax.f32 %v1042_v51, 0.0  ;;  %v1045_v2 = vadd.f32 %v1044_v50, %v980_v63  ;;  %v1388_v4 = vpop.f32.mrb[28].mxu0 }
 0x132   : > { %v1389_v5 = vpop.f32.mrb[29].mxu0 }
 0x133   : > { %v1270_v6 = vpack.c.bf16 %v1060_v1, %v1060_v1  ;;  %v1061_v7 = vmax.f32 %v1045_v2, 0.0  ;;  %v1390_v8 = vadd.f32 %v1389_v5, %v1388_v4  ;;  %v1391_v9 = vpop.f32.mrb[30].mxu0 }
 0x134   : > { %v1392_v10 = vpop.f32.mrb[31].mxu0 }
 0x135   : > { %1101 = vst.msk [vmem:[%s1788_s5 + $0x10] sm:$0xf] %vm1096_vm1, %v1270_v6  ;;  %v1271_v0 = vpack.c.bf16 %v1061_v7, %v1061_v7  ;;  %v985_v11 = vadd.f32 %v1390_v8, %v1780_v16  ;;  %v1393_v12 = vadd.f32 %v1392_v10, %v1391_v9 }
 0x137   : > { %1102 = vst.msk [vmem:[%s1788_s5 + $0x14] sm:$0xf] %vm1096_vm1, %v1271_v0  ;;  %v1050_v3 = vadd.f32 %v1422_v42, %v985_v11  ;;  %v988_v13 = vadd.f32 %v1393_v12, %v1782_v18 }
 0x139   : > { %v1062_v14 = vmax.f32 %v1050_v3, 0.0  ;;  %v1053_v15 = vadd.f32 %v1423_v46, %v988_v13 }
 0x13b   : > { %v1272_v17 = vpack.c.bf16 %v1062_v14, %v1062_v14  ;;  %v1063_v20 = vmax.f32 %v1053_v15, 0.0 }
 0x13d   : > { %1103 = vst.msk [vmem:[%s1788_s5 + $0x18] sm:$0xf] %vm1096_vm1, %v1272_v17  ;;  %v1273_v21 = vpack.c.bf16 %v1063_v20, %v1063_v20 }
 0x13f   : > { %1104 = vst.msk [vmem:[%s1788_s5 + $0x1c] sm:$0xf] %vm1096_vm1, %v1273_v21 }
 0x140 PF: > { %s13_s12 = sadd.s32 1, %s1533_s12  }
 0x141   : > { %p10_p4 = scmp.ge.s32.totalorder %s13_s12, 4  }
 0x143   :  { %12 = sbr.rel (!%p10_p4) target bundleno = 1 (0x1), region = 62 }

// kernel: baseline_3dconvnet_forward.5
= control target key start
LH: loop header
LB: loop body
LE: loop exit
PB: predicated region body
PF: predicated region fallthrough
CT: control target
= control target key end

     0   :  { %14 = vsyncpa [#allocation4], 0  ;;  %s2000_s0 = inlined_call_operand.vmem [shape: bf16[2,4096], index: 0, kind: input, shape index: {}]   ;;  %s2001_s1 = inlined_call_operand.vmem [shape: f32[2,4096], index: 1, kind: input, shape index: {}]   ;;  %s2002_s2 = inlined_call_operand.vmem [shape: bf16[4096,128], index: 2, kind: input, shape index: {}]   ;;  %s2003_s3 = inlined_call_operand.vmem [shape: f32[1,128], index: 3, kind: input, shape index: {}]   ;;  %s2004_s4 = inlined_call_operand.vmem [shape: f32[128,10], index: 4, kind: input, shape index: {}]   ;;  %s2005_s5 = inlined_call_operand.vmem [shape: f32[1,10], index: 5, kind: input, shape index: {}]   ;;  %s2006_s6 = inlined_call_operand.vmem [shape: s32[2,1], index: 6, kind: input, shape index: {}]   ;;  %s2007_s7 = inlined_call_operand.hbm [shape: f32[2,10], index: 7, kind: output, shape index: {0}]   ;;  %s2008_s8 = inlined_call_operand.hbm [shape: f32[1,1], index: 8, kind: output, shape index: {1}]  }
   0x1   :  { %15 = vsyncpa [#allocation6], 0  ;;  %s1777_s27 = smov 0  }
   0x2 LB: > { %s1783_s28 = sadd.s32 4294967295, %s1722_s27   ;;  %p1315_p0 = scmp.ge.s32.totalorder %s1722_s27, 1  ;;  %s1722_s27 = sphi %s1777_s27, %s21_s27  }
   0x3   : > { %p279_p1 = scmp.lt.s32.totalorder %s1722_s27, 5 }
   0x5   : > { %p280_p2 = pnand %p1315_p0, %p279_p1 }
   0x6   : > { %s1316_s29 = sshll.u32 (!%p280_p2), %s1783_s28, 3  ;;  %s1319_s30 = sshll.u32 (!%p280_p2), %s1783_s28, 7 }
   0x7   : > { %283 = sbr.rel (%p280_p2) target bundleno = 919 (0x397), region = 48  ;;  %p318_p3 = scmp.lt.s32.totalorder (!%p280_p2), %s1316_s29, 31 }
   0x8   : > { %p329_p4 = scmp.lt.s32.totalorder (!%p280_p2), %s1319_s30, 511  ;;  %p1321_p5 = scmp.ne.s32.totalorder (!%p280_p2), %s1783_s28, 0 }
   0xe   : > { %s2010_s29 = smov (!%p318_p3, %s1316_s29), 31  ;;  %s2012_s30 = smov (!%p329_p4, %s1319_s30), 511 }
   0xf   : > { %s320_s11 = scalar_lea.vmem %s2000_s0, %s2010_s29  ;;  %s1318_s12 = sshll.u32 %s2010_s29, 1  ;;  %v1724_v0 = vmov (!%p1321_p5), 0.0  }
  0x10   : > { %s1799_s15 = scalar_lea.vmem %s2001_s1, %s1318_s12  ;;  %s1320_s16 = sshll.u32 %s2012_s30, 2  ;;  %339 = vst [vmem:[#allocation2] sm:$0x3] (!%p1321_p5), %v1724_v0 }
  0x11   : > { %s1804_s19 = scalar_lea.vmem %s2002_s2, %s1320_s16  ;;  %338 = sbr.rel (%p1321_p5) target bundleno = 24 (0x18), region = 52 }
  0x18 PF: > { %v1587_v1 = vld [vmem:[%s1804_s19 + $0x40] sm:$0xff]   ;;  %v1591_v5 = vld [vmem:[%s1804_s19 + $0x48] sm:$0xff]   ;;  %v1595_v9 = vld [vmem:[%s1804_s19 + $0x50] sm:$0xff]   ;;  %v358_v29 = vlaneseq  ;;  %v1725_v38 = vmov 1983009808   ;;  %p1386_p6 = scmp.ne.s32.totalorder %s1783_s28, 3 }
  0x19   : > { %v1588_v2 = vld [vmem:[%s1804_s19 + $0xc0] sm:$0xff]   ;;  %1395 = vmatprep.subr.bf16.mxu0 %v1587_v1  ;;  %v1592_v6 = vld [vmem:[%s1804_s19 + $0xc8] sm:$0xff]   ;;  %v1596_v10 = vld [vmem:[%s1804_s19 + $0xd0] sm:$0xff]   ;;  %v356_v39 = vunpack.c.l.s4 %v1725_v38  ;;  %vm1727_vm2 = vmmov (!%p1386_p6), 0   ;;  %vm1185_vm3 = vcmask (!%p1386_p6), 74752   ;;  %vm1211_vm5 = vcmask (!%p1386_p6), 1041408  }
  0x1a   : > { %v1589_v3 = vld [vmem:[%s1804_s19] sm:$0xff]   ;;  %1417 = vmatprep.subr.bf16.mxu1 %v1588_v2  ;;  %v1593_v7 = vld [vmem:[%s1804_s19 + $0x8] sm:$0xff]   ;;  %v1597_v11 = vld [vmem:[%s1804_s19 + $0x10] sm:$0xff]   ;;  %v359_v34 = vshrl.u32 %v358_v29, 7  ;;  %vm1221_vm6 = vcmask (!%p1386_p6), 0  }
  0x1b   : > { %v1590_v4 = vld [vmem:[%s1804_s19 + $0x80] sm:$0xff]   ;;  %1396 = vmatpush3.bf16.msra.mxu0 %v1589_v3  ;;  %v1594_v8 = vld [vmem:[%s1804_s19 + $0x88] sm:$0xff]   ;;  %v1598_v12 = vld [vmem:[%s1804_s19 + $0x90] sm:$0xff]   ;;  %v357_v43 = vunpack.c.0.s8 %v356_v39 }
  0x1c   : > { %1418 = vmatpush3.bf16.msra.mxu1 %v1590_v4  ;;  %1397 = vmatprep.subr.bf16.mxu0 %v1591_v5  ;;  %v1599_v13 = vld [vmem:[%s1804_s19 + $0x58] sm:$0xff]   ;;  %v1603_v17 = vld [vmem:[%s1804_s19 + $0x60] sm:$0xff]   ;;  %v1607_v21 = vld [vmem:[%s1804_s19 + $0x68] sm:$0xff]  }
  0x1d   : > { %1419 = vmatprep.subr.bf16.mxu1 %v1592_v6  ;;  %v1600_v14 = vld [vmem:[%s1804_s19 + $0xd8] sm:$0xff]   ;;  %v1604_v18 = vld [vmem:[%s1804_s19 + $0xe0] sm:$0xff]   ;;  %v1608_v22 = vld [vmem:[%s1804_s19 + $0xe8] sm:$0xff]   ;;  %v1851_v45 = vsub.s32 %v357_v43, %v359_v34 }
  0x1e   : > { %v1601_v15 = vld [vmem:[%s1804_s19 + $0x18] sm:$0xff]   ;;  %v1605_v19 = vld [vmem:[%s1804_s19 + $0x20] sm:$0xff]   ;;  %v1609_v23 = vld [vmem:[%s1804_s19 + $0x28] sm:$0xff]  }
  0x1f   : > { %1398 = vmatpush3.bf16.msra.mxu0 %v1593_v7  ;;  %v1602_v16 = vld [vmem:[%s1804_s19 + $0x98] sm:$0xff]   ;;  %v1606_v20 = vld [vmem:[%s1804_s19 + $0xa0] sm:$0xff]   ;;  %v1610_v24 = vld [vmem:[%s1804_s19 + $0xa8] sm:$0xff]  }
  0x20   : > { %1420 = vmatpush3.bf16.msra.mxu1 %v1594_v8  ;;  %1399 = vmatprep.subr.bf16.mxu0 %v1595_v9  ;;  %v1611_v25 = vld [vmem:[%s1804_s19 + $0x70] sm:$0xff]   ;;  %v1615_v30 = vld [vmem:[%s1804_s19 + $0x78] sm:$0xff]   ;;  %v340_v35 = vld [vmem:[%s1799_s15] sm:$0xff] }
  0x21   : > { %1421 = vmatprep.subr.bf16.mxu1 %v1596_v10  ;;  %v1612_v26 = vld [vmem:[%s1804_s19 + $0xf0] sm:$0xff]   ;;  %v1616_v31 = vld [vmem:[%s1804_s19 + $0xf8] sm:$0xff]   ;;  %v1846_v36 = vld [vmem:[%s320_s11] sm:$0xff]  ;;  %vm342_vm0 = vcmp.lt.f32.partialorder %v340_v35, 0.8 }
  0x22   : > { %v1613_v27 = vld [vmem:[%s1804_s19 + $0x30] sm:$0xff]   ;;  %v1617_v32 = vld [vmem:[%s1804_s19 + $0x38] sm:$0xff]   ;;  %v345_v37 = vunpack.c.l.bf16 %v1846_v36  ;;  %v1619_v40 = vld [vmem:[%s1804_s19 + $0x140] sm:$0xff]   ;;  %v346_v7 = vunpack.c.h.bf16 %v1846_v36 }
  0x23   : > { %1400 = vmatpush3.bf16.msra.mxu0 %v1597_v11  ;;  %v1614_v28 = vld [vmem:[%s1804_s19 + $0xb0] sm:$0xff]   ;;  %v1618_v33 = vld [vmem:[%s1804_s19 + $0xb8] sm:$0xff]   ;;  %v1620_v41 = vld [vmem:[%s1804_s19 + $0x1c0] sm:$0xff]  }
  0x24   : > { %1422 = vmatpush3.bf16.msra.mxu1 %v1598_v12  ;;  %1401 = vmatprep.subr.bf16.mxu0 %v1599_v13  ;;  %v347_v42 = vmul.f32 1.25, %v345_v37  ;;  %v1621_v52 = vld [vmem:[%s1804_s19 + $0x100] sm:$0xff]   ;;  %v1623_v57 = vld [vmem:[%s1804_s19 + $0x148] sm:$0xff]   ;;  %v1627_v61 = vld [vmem:[%s1804_s19 + $0x150] sm:$0xff]   ;;  %v348_v12 = vmul.f32 1.25, %v346_v7 }
  0x25   : > { %1423 = vmatprep.subr.bf16.mxu1 %v1600_v14  ;;  %v1622_v55 = vld [vmem:[%s1804_s19 + $0x180] sm:$0xff]   ;;  %v1624_v58 = vld [vmem:[%s1804_s19 + $0x1c8] sm:$0xff]   ;;  %v1628_v62 = vld [vmem:[%s1804_s19 + $0x1d0] sm:$0xff]  }
  0x26   : > { %v349_v44 = vsel %vm342_vm0, %v347_v42, 0.0  ;;  %v1625_v59 = vld [vmem:[%s1804_s19 + $0x108] sm:$0xff]   ;;  %v1629_v63 = vld [vmem:[%s1804_s19 + $0x110] sm:$0xff]   ;;  %v1631_v1 = vld [vmem:[%s1804_s19 + $0x158] sm:$0xff]  }
  0x27   : > { %1402 = vmatpush3.bf16.msra.mxu0 %v1601_v15  ;;  %v354_v46 = vcombine.high %v349_v44, %v349_v44  ;;  %v361_v47 = vrot.slane %v349_v44, %v1851_v45  ;;  %v1626_v60 = vld [vmem:[%s1804_s19 + $0x188] sm:$0xff]   ;;  %v1630_v0 = vld [vmem:[%s1804_s19 + $0x190] sm:$0xff]   ;;  %v1632_v2 = vld [vmem:[%s1804_s19 + $0x1d8] sm:$0xff]  }
  0x28   : > { %1424 = vmatpush3.bf16.msra.mxu1 %v1602_v16  ;;  %1403 = vmatprep.subr.bf16.mxu0 %v1603_v17  ;;  %v1633_v3 = vld [vmem:[%s1804_s19 + $0x118] sm:$0xff]   ;;  %v1635_v5 = vld [vmem:[%s1804_s19 + $0x160] sm:$0xff]   ;;  %v1639_v10 = vld [vmem:[%s1804_s19 + $0x168] sm:$0xff]  }
  0x29   : > { %1425 = vmatprep.subr.bf16.mxu1 %v1604_v18  ;;  %v368_v48 = vrot.slane %v354_v46, %v1851_v45  ;;  %v369_v49 = vcombine.high %v361_v47, %v361_v47  ;;  %v396_v51 = vpack.c.bf16 %v361_v47, %v361_v47  ;;  %v1634_v4 = vld [vmem:[%s1804_s19 + $0x198] sm:$0xff]   ;;  %v1636_v6 = vld [vmem:[%s1804_s19 + $0x1e0] sm:$0xff]   ;;  %v1640_v11 = vld [vmem:[%s1804_s19 + $0x1e8] sm:$0xff]  }
  0x2a   : > { %v1637_v8 = vld [vmem:[%s1804_s19 + $0x120] sm:$0xff]   ;;  %v1641_v13 = vld [vmem:[%s1804_s19 + $0x128] sm:$0xff]   ;;  %v1643_v15 = vld [vmem:[%s1804_s19 + $0x170] sm:$0xff]  }
  0x2b   : > { %1404 = vmatpush3.bf16.msra.mxu0 %v1605_v19  ;;  %v370_v50 = vcombine.high %v368_v48, %v368_v48  ;;  %v397_v53 = vpack.c.bf16 %v369_v49, %v369_v49  ;;  %v398_v54 = vpack.c.bf16 %v368_v48, %v368_v48  ;;  %v1638_v9 = vld [vmem:[%s1804_s19 + $0x1a0] sm:$0xff]   ;;  %v1642_v14 = vld [vmem:[%s1804_s19 + $0x1a8] sm:$0xff]   ;;  %v1644_v17 = vld [vmem:[%s1804_s19 + $0x1f0] sm:$0xff]  }
  0x2c   : > { %1426 = vmatpush3.bf16.msra.mxu1 %v1606_v20  ;;  %1405 = vmatprep.subr.bf16.mxu0 %v1607_v21  ;;  %v341_v16 = vld [vmem:[%s1799_s15 + $0x8] sm:$0xff]  ;;  %v1645_v19 = vld [vmem:[%s1804_s19 + $0x130] sm:$0xff]  }
  0x2d   : > { %1427 = vmatprep.subr.bf16.mxu1 %v1608_v22  ;;  %v399_v56 = vpack.c.bf16 %v370_v50, %v370_v50  ;;  %948 = vmatprep.mubr.bf16.mxu0 %v397_v53  ;;  %vm343_vm1 = vcmp.lt.f32.partialorder %v341_v16, 0.8  ;;  %v1646_v22 = vld [vmem:[%s1804_s19 + $0x1b0] sm:$0xff]   ;;  %v1104_v16 = vld [vmem:[%s2004_s4 + $0x60] sm:$0xff] (!%p1386_p6) }
  0x2e   : > { %v350_v18 = vsel %vm343_vm1, %v348_v12, 0.0  ;;  %v1098_v7 = vld [vmem:[%s2004_s4 + $0x30] sm:$0xff] (!%p1386_p6) }
  0x2f   : > { %1406 = vmatpush3.bf16.msra.mxu0 %v1609_v23  ;;  %988 = vmatprep.mubr.bf16.mxu1 %v399_v56  ;;  %v378_v20 = vrot.slane %v350_v18, %v1851_v45  ;;  %v371_v21 = vcombine.high %v350_v18, %v350_v18  ;;  %v1647_v23 = vld [vmem:[%s1804_s19 + $0x178] sm:$0xff]  }
  0x30   : > { %1428 = vmatpush3.bf16.msra.mxu1 %v1610_v24  ;;  %1407 = vmatprep.subr.bf16.mxu0 %v1611_v25  ;;  %v1648_v24 = vld [vmem:[%s1804_s19 + $0x1f8] sm:$0xff]  }
  0x31   : > { %1429 = vmatprep.subr.bf16.mxu1 %v1612_v26  ;;  %v386_v25 = vcombine.high %v378_v20, %v378_v20  ;;  %v385_v26 = vrot.slane %v371_v21, %v1851_v45  ;;  %v1106_v21 = vld [vmem:[%s2004_s4 + $0x70] sm:$0xff] (!%p1386_p6) }
  0x33   : > { %1408 = vmatpush3.bf16.msra.mxu0 %v1613_v27  ;;  %v1649_v27 = vld [vmem:[%s1804_s19 + $0x138] sm:$0xff]   ;;  %v402_v34 = vpack.c.bf16 %v385_v26, %v385_v26 }
  0x34   : > { %1430 = vmatpush3.bf16.msra.mxu1 %v1614_v28  ;;  %1409 = vmatprep.subr.bf16.mxu0 %v1615_v30  ;;  %v401_v28 = vpack.c.bf16 %v386_v25, %v386_v25  ;;  %v387_v30 = vcombine.high %v385_v26, %v385_v26  ;;  %v1729_v26 = vmov (!%p1386_p6), 0  }
  0x35   : > { %1431 = vmatprep.subr.bf16.mxu1 %v1616_v31  ;;  %v1650_v31 = vld [vmem:[%s1804_s19 + $0x1b8] sm:$0xff]   ;;  %1651 = vset.pattern.permute.xlu0 (!%p1386_p6), %v1729_v26 }
  0x37   : > { %1410 = vmatpush3.bf16.msra.mxu0 %v1617_v32  ;;  %v403_v32 = vpack.c.bf16 %v387_v30, %v387_v30 }
  0x38   : > { %1432 = vmatpush3.bf16.msra.mxu1 %v1618_v33  ;;  %1439 = vmatprep.subr.bf16.mxu0 %v1619_v40  ;;  %v400_v33 = vpack.c.bf16 %v378_v20, %v378_v20  ;;  %v1387_v20 = vld [vmem:[%s2003_s3] ss:$0 sm:$0xff] (!%p1386_p6) }
  0x39   : > { %1461 = vmatprep.subr.bf16.mxu1 %v1620_v41 }
  0x3a   : > { %949 = vmatmul.mubr.bf16.vlgmr.msra.gmra.mrb[0].mxu0 %v396_v51 }
  0x3b   : > { %989 = vmatmul.mubr.bf16.vlgmr.msra.gmra.mrb[0].mxu1 %v398_v54  ;;  %1440 = vmatpush3.bf16.msra.mxu0 %v1621_v52 }
  0x3c   : > { %1462 = vmatpush3.bf16.msra.mxu1 %v1622_v55  ;;  %1441 = vmatprep.subr.bf16.mxu0 %v1623_v57  ;;  %v351_v57 = vld [vmem:[#allocation2] sm:$0x3] }
  0x3d   : > { %1463 = vmatprep.subr.bf16.mxu1 %v1624_v58  ;;  %1028 = vmatprep.mubr.bf16.mxu0 %v401_v28 }
  0x3e   : > { %1068 = vmatprep.mubr.bf16.mxu1 %v403_v32 }
  0x3f   : > { %1442 = vmatpush3.bf16.msra.mxu0 %v1625_v59 }
  0x40   : > { %1464 = vmatpush3.bf16.msra.mxu1 %v1626_v60  ;;  %1443 = vmatprep.subr.bf16.mxu0 %v1627_v61  ;;  %v1092_v60 = vld [vmem:[%s2004_s4] sm:$0xff] (!%p1386_p6)  ;;  %v1093_v61 = vld [vmem:[%s2004_s4 + $0x8] sm:$0xff] (!%p1386_p6) }
  0x41   : > { %1465 = vmatprep.subr.bf16.mxu1 %v1628_v62  ;;  %v1094_v62 = vld [vmem:[%s2004_s4 + $0x10] sm:$0xff] (!%p1386_p6) }
  0x43   : > { %1444 = vmatpush3.bf16.msra.mxu0 %v1629_v63  ;;  %v1726_v63 = vmov (!%p1386_p6), 0.0|0.0  }
  0x44   : > { %1466 = vmatpush3.bf16.msra.mxu1 %v1630_v0  ;;  %1445 = vmatprep.subr.bf16.mxu0 %v1631_v1  ;;  %v1536_v0 = vpack.c.bf16 (!%p1386_p6), %v1093_v61, %v1092_v60  ;;  %v1095_v1 = vld [vmem:[%s2004_s4 + $0x18] sm:$0xff] (!%p1386_p6) }
  0x45   : > { %1467 = vmatprep.subr.bf16.mxu1 %v1632_v2  ;;  %v1728_v2 = vmov (!%p1386_p6), 0.0  }
  0x47   : > { %1446 = vmatpush3.bf16.msra.mxu0 %v1633_v3  ;;  %v1539_v3 = vpack.c.bf16 (!%p1386_p6), %v1095_v1, %v1094_v62 }
  0x48   : > { %1468 = vmatpush3.bf16.msra.mxu1 %v1634_v4  ;;  %1447 = vmatprep.subr.bf16.mxu0 %v1635_v5  ;;  %v1096_v4 = vld [vmem:[%s2004_s4 + $0x20] sm:$0xff] (!%p1386_p6)  ;;  %v1097_v5 = vld [vmem:[%s2004_s4 + $0x28] sm:$0xff] (!%p1386_p6) }
  0x49   : > { %1469 = vmatprep.subr.bf16.mxu1 %v1636_v6  ;;  %v1542_v6 = vpack.c.bf16 (!%p1386_p6), %v1097_v5, %v1096_v4 }
  0x4b   : > { %1448 = vmatpush3.bf16.msra.mxu0 %v1637_v8  ;;  %v1099_v8 = vld [vmem:[%s2004_s4 + $0x38] sm:$0xff] (!%p1386_p6) }
  0x4c   : > { %1470 = vmatpush3.bf16.msra.mxu1 %v1638_v9  ;;  %1449 = vmatprep.subr.bf16.mxu0 %v1639_v10  ;;  %v1545_v9 = vpack.c.bf16 (!%p1386_p6), %v1099_v8, %v1098_v7  ;;  %v1100_v10 = vld [vmem:[%s2004_s4 + $0x40] sm:$0xff] (!%p1386_p6) }
  0x4d   : > { %1471 = vmatprep.subr.bf16.mxu1 %v1640_v11  ;;  %v1101_v11 = vld [vmem:[%s2004_s4 + $0x48] sm:$0xff] (!%p1386_p6) }
  0x4e   : > { %v1548_v12 = vpack.c.bf16 (!%p1386_p6), %v1101_v11, %v1100_v10 }
  0x4f   : > { %1450 = vmatpush3.bf16.msra.mxu0 %v1641_v13  ;;  %v1102_v13 = vld [vmem:[%s2004_s4 + $0x50] sm:$0xff] (!%p1386_p6) }
  0x50   : > { %1472 = vmatpush3.bf16.msra.mxu1 %v1642_v14  ;;  %1451 = vmatprep.subr.bf16.mxu0 %v1643_v15  ;;  %v1103_v14 = vld [vmem:[%s2004_s4 + $0x58] sm:$0xff] (!%p1386_p6) }
  0x51   : > { %1473 = vmatprep.subr.bf16.mxu1 %v1644_v17  ;;  %v1551_v15 = vpack.c.bf16 (!%p1386_p6), %v1103_v14, %v1102_v13  ;;  %v1105_v17 = vld [vmem:[%s2004_s4 + $0x68] sm:$0xff] (!%p1386_p6) }
  0x52   : > { %v1554_v18 = vpack.c.bf16 (!%p1386_p6), %v1105_v17, %v1104_v16 }
  0x53   : > { %1452 = vmatpush3.bf16.msra.mxu0 %v1645_v19 }
  0x54   : > { %1474 = vmatpush3.bf16.msra.mxu1 %v1646_v22  ;;  %1453 = vmatprep.subr.bf16.mxu0 %v1647_v23  ;;  %v1107_v22 = vld [vmem:[%s2004_s4 + $0x78] sm:$0xff] (!%p1386_p6) }
  0x55   : > { %1475 = vmatprep.subr.bf16.mxu1 %v1648_v24  ;;  %v1557_v24 = vpack.c.bf16 (!%p1386_p6), %v1107_v22, %v1106_v21 }
  0x57   : > { %1454 = vmatpush3.bf16.msra.mxu0 %v1649_v27  ;;  %v1388_v27 = vld [vmem:[%s2005_s5] ss:$0 sm:$0xff] (!%p1386_p6) }
  0x58   : > { %1476 = vmatpush3.bf16.msra.mxu1 %v1650_v31  ;;  %1535 = vmatprep.subr.bf16.mxu0 (!%p1386_p6), %v1726_v63 }
  0x5a   : > { %1029 = vmatmul.mubr.bf16.vlgmr.msra.gmra.mrb[4].mxu0 %v400_v33  ;;  %v1201_v33 = vld [vmem:[%s2006_s6] sm:$0x3] (!%p1386_p6) }
  0x5b   : > { %1069 = vmatmul.mubr.bf16.vlgmr.msra.gmra.mrb[4].mxu1 %v402_v34  ;;  %1532 = vmatprep.mubr.msk.f32.mxu0 (!%p1386_p6), %vm1727_vm2, %v1728_v2 }
  0x5c   : > { %1537 = vmatpush3.bf16.msra.mxu0 (!%p1386_p6), %v1536_v0 }
  0x5d   : > { %1538 = vmatprep.subr.bf16.mxu0 (!%p1386_p6), %v1726_v63 }
  0x60   : > { %1540 = vmatpush3.bf16.msra.mxu0 (!%p1386_p6), %v1539_v3 }
  0x61   : > { %1541 = vmatprep.subr.bf16.mxu0 (!%p1386_p6), %v1726_v63 }
  0x64   : > { %1543 = vmatpush3.bf16.msra.mxu0 (!%p1386_p6), %v1542_v6 }
  0x65   : > { %1544 = vmatprep.subr.bf16.mxu0 (!%p1386_p6), %v1726_v63 }
  0x68   : > { %1546 = vmatpush3.bf16.msra.mxu0 (!%p1386_p6), %v1545_v9 }
  0x69   : > { %1547 = vmatprep.subr.bf16.mxu0 (!%p1386_p6), %v1726_v63 }
  0x6c   : > { %1549 = vmatpush3.bf16.msra.mxu0 (!%p1386_p6), %v1548_v12 }
  0x6d   : > { %1550 = vmatprep.subr.bf16.mxu0 (!%p1386_p6), %v1726_v63 }
  0x70   : > { %1552 = vmatpush3.bf16.msra.mxu0 (!%p1386_p6), %v1551_v15 }
  0x71   : > { %1553 = vmatprep.subr.bf16.mxu0 (!%p1386_p6), %v1726_v63 }
  0x74   : > { %1555 = vmatpush3.bf16.msra.mxu0 (!%p1386_p6), %v1554_v18 }
  0x75   : > { %1556 = vmatprep.subr.bf16.mxu0 (!%p1386_p6), %v1726_v63 }
  0x78   : > { %1558 = vmatpush3.bf16.msra.mxu0 (!%p1386_p6), %v1557_v24 }
 0x10d   : > { %v1411_v35 = vpop.f32.mrb[0].mxu0 }
 0x10e   : > { %v1433_v36 = vpop.f32.mrb[0].mxu1  ;;  %v1412_v37 = vpop.f32.mrb[1].mxu0 }
 0x10f   : > { %v1413_v38 = vadd.f32 %v1412_v37, %v1411_v35  ;;  %v1434_v39 = vpop.f32.mrb[1].mxu1  ;;  %v1414_v40 = vpop.f32.mrb[2].mxu0  ;;  %v1200_v37 = vand.u32 (!%p1386_p6), 127, %v358_v29 }
 0x110   : > { %v1435_v41 = vadd.f32 %v1434_v39, %v1433_v36  ;;  %v1436_v42 = vpop.f32.mrb[2].mxu1  ;;  %v1415_v43 = vpop.f32.mrb[3].mxu0 }
 0x111   : > { %v1437_v44 = vpop.f32.mrb[3].mxu1 }
 0x112   : > { %v991_v45 = vadd.f32 %v1435_v41, %v1413_v38 }
 0x12d   : > { %v1455_v46 = vpop.f32.mrb[4].mxu0 }
 0x12e   : > { %v1477_v47 = vpop.f32.mrb[4].mxu1  ;;  %v1456_v48 = vpop.f32.mrb[5].mxu0 }
 0x12f   : > { %v1457_v49 = vadd.f32 %v1456_v48, %v1455_v46  ;;  %v1478_v50 = vpop.f32.mrb[5].mxu1  ;;  %v1458_v51 = vpop.f32.mrb[6].mxu0 }
 0x130   : > { %v1479_v52 = vadd.f32 %v1478_v50, %v1477_v47  ;;  %v1480_v53 = vpop.f32.mrb[6].mxu1  ;;  %v1459_v54 = vpop.f32.mrb[7].mxu0 }
 0x131   : > { %v1031_v55 = vadd.f32 %v1457_v49, %v991_v45  ;;  %v1481_v56 = vpop.f32.mrb[7].mxu1  ;;  %1081 = sbr.rel (%p1386_p6) target bundleno = 871 (0x367), region = 56 }
 0x133   : > { %v1071_v58 = vadd.f32 %v1479_v52, %v1031_v55 }
 0x135   : > { %v1076_v59 = vadd.f32 %v1071_v58, %v351_v57 }
 0x137   : > { %1077 = vst [vmem:[#allocation2] sm:$0x3] %v1076_v59 }
 0x13e   : > { %v1082_v19 = vld [vmem:[#allocation2] sm:$0x3] }
 0x13f   : > { %v1090_v23 = vadd.f32 %v1387_v20, %v1082_v19 }
 0x141   : > { %v1091_v25 = vmax.f32 %v1090_v23, 0.0 }
 0x143   : > { %1533 = vmatmul.mubr.f32.vlgmr.msra.gmra.mrb[0].mxu0 %v1091_v25 }
 0x216   : > { %v1181_v28 = vpop.f32.mrb[0].mxu0 }
 0x217   : > { %v1182_v30 = vadd.f32 %v1388_v27, %v1181_v28  ;;  %v1534_v31 = vpop.f32.mrb[1].mxu0 }
 0x219   : > { %v1187_v32 = vsel %vm1185_vm3, %v1182_v30, -inf  ;;  %1186 = vst.msk [vmem:[#allocation3] sm:$0x3] %vm1185_vm3, %v1182_v30 }
 0x21a   : > { %1188 = vmax.xlane.f32.xlu0 %v1187_v32 }
 0x230   : > { %1203 = vperm.xlu0 %1651, %v1201_v33  }
 0x2a7   : > { %v1189_v34 = vpop.xlane.xlu0 %1188 }
 0x2a8   : > { %v1190_v35 = vsub.f32 %v1182_v30, %v1189_v34 }
 0x2aa   : > { %v1191_v36 = vmul.f32 1.442695, %v1190_v35 }
 0x2ac   : > { %1652 = vpow2.f32 %v1191_v36 }
 0x2af   : > { %v1204_v38 = vpop.permute.xlu0 %1203 }
 0x2b0   : > { %vm1205_vm4 = vcmp.eq.s32.totalorder %v1200_v37, %v1204_v38 }
 0x2b1   : > { %v1206_v41 = vsel %vm1205_vm4, %v1182_v30, 0.0 }
 0x2b2   : > { %v1207_v42 = vsel %vm1185_vm3, %v1206_v41, 0.0 }
 0x2b6   : > { %v1653_v39 = vpop.eup %1652 }
 0x2b7   : > { %v1193_v40 = vsel %vm1185_vm3, %v1653_v39, 0.0 }
 0x2b8   : > { %1194 = vadd.xlane.f32.xlu1 %v1193_v40 }
 0x2bc   : > { %1208 = vadd.xlane.f32.xlu1 %v1207_v42 }
 0x345   : > { %v1195_v43 = vpop.xlane.xlu1 %1194 }
 0x346   : > { %1654 = vlog2.f32 %v1195_v43 }
 0x349   : > { %v1209_v47 = vpop.xlane.xlu1 %1208 }
 0x350   : > { %v1655_v44 = vpop.eup %1654 }
 0x351   : > { %v1197_v45 = vmul.f32 0.6931472, %v1655_v44 }
 0x353   : > { %v1198_v46 = vadd.f32 %v1197_v45, %v1189_v34 }
 0x355   : > { %v1210_v48 = vsub.f32 %v1198_v46, %v1209_v47 }
 0x357   : > { %v1212_v49 = vsel %vm1211_vm5, %v1210_v48, 0.0 }
 0x358   : > { %v1213_v29 = vrot.slane %v1212_v49, 4 }
 0x35a   : > { %v1214_v50 = vadd.f32 %v1213_v29, %v1212_v49 }
 0x35c   : > { %v1215_v51 = vrot.slane %v1214_v50, 2 }
 0x35e   : > { %v1216_v52 = vadd.f32 %v1215_v51, %v1214_v50 }
 0x360   : > { %v1217_v53 = vrot.slane %v1216_v52, 1 }
 0x362   : > { %v1218_v54 = vadd.f32 %v1217_v53, %v1216_v52 }
 0x364   : > { %v1220_v55 = vmul.f32 0.5, %v1218_v54 }
 0x366   : > { %1222 = vst.msk [vmem:[#allocation5] sm:$0x1] %vm1221_vm6, %v1220_v55 }
 0x367 PF: > { %p1567_p7 = scmp.eq.s32.totalorder %s1783_s28, 3  ;;  %s1730_s20 = smov [#allocation3]  }
 0x368   : > { %s1230_s21 = sshll.u32 %s1730_s20, 4  ;;  %s1731_s22 = smov [#allocation5]   ;;  %s1231_s21 = int_to_ptr.vmem [resolvable:$true] %s1230_s21 }
 0x369   : > { %s1241_s23 = sshll.u32 %s1731_s22, 4  ;;  %s1656_s24 = scalar_lea.vmem %s1231_s21, 32  ;;  %s1242_s23 = int_to_ptr.vmem [resolvable:$true] %s1241_s23 }
 0x36a   : > { %p1657_p8 = scmp.ne.s32.totalorder %s1231_s21, %s1656_s24  ;;  %p1663_p11 = scmp.lt.s32.totalorder %s1231_s21, %s1231_s21 }
 0x36b   : > { %p1664_p12 = scmp.lt.s32.totalorder %s1656_s24, %s1656_s24 }
 0x36c   : > { %p1658_p9 = pnand %p1657_p8, %p1567_p7 }
 0x36d   : > { %p1665_p13 = por %p1664_p12, %p1663_p11 }
 0x36e   : > { %p1659_p10 = pneg %p1658_p9 }
 0x370   : > { %p1666_p0 = pnand %p1665_p13, %p1659_p10 }
 0x372   : > { %1669 = shalt.err (!%p1666_p0)
}
 0x373   : > { %s1670_s29 = scalar_lea.hbm %s2007_s7, 32 }
 0x374   : > { %p1671_p1 = scmp.ne.s32.totalorder %s2007_s7, %s1670_s29  ;;  %p1676_p4 = scmp.lt.u32.totalorder %s1670_s29, %s2007_s7 }
 0x376   : > { %p1672_p2 = pnand %p1671_p1, %p1567_p7 }
 0x378   : > { %p1673_p3 = pneg %p1672_p2 }
 0x37a   : > { %p1678_p5 = pnand %p1676_p4, %p1673_p3 }
 0x37c   : > { %1681 = shalt.err (!%p1678_p5)
}
 0x37d   : > { %1560 = dma.vmem_to_hbm [thread:$0]  (%p1567_p7), %s1231_s21, 32, %s2007_s7, [#allocation4]  }
 0x37e   : > { %s1682_s14 = scalar_lea.vmem %s1242_s23, 16  ;;  %s1688_s15 = scalar_lea.vmem %s1242_s23, 32 }
 0x37f   : > { %p1683_p6 = scmp.ne.s32.totalorder %s1242_s23, %s1682_s14  ;;  %p1689_p10 = scmp.lt.s32.totalorder %s1242_s23, %s1242_s23 }
 0x380   : > { %p1690_p11 = scmp.lt.s32.totalorder %s1688_s15, %s1682_s14 }
 0x381   : > { %p1684_p8 = pnand %p1683_p6, %p1567_p7 }
 0x382   : > { %p1691_p12 = por %p1690_p11, %p1689_p10 }
 0x383   : > { %p1685_p9 = pneg %p1684_p8 }
 0x385   : > { %p1692_p13 = pnand %p1691_p12, %p1685_p9 }
 0x387   : > { %1695 = shalt.err (!%p1692_p13)
}
 0x388   : > { %s1696_s18 = scalar_lea.hbm %s2008_s8, 16 }
 0x389   : > { %p1697_p0 = scmp.ne.s32.totalorder %s2008_s8, %s1696_s18  ;;  %p1702_p3 = scmp.lt.u32.totalorder %s1696_s18, %s2008_s8 }
 0x38b   : > { %p1698_p1 = pnand %p1697_p0, %p1567_p7 }
 0x38d   : > { %p1699_p2 = pneg %p1698_p1 }
 0x38f   : > { %p1704_p4 = pnand %p1702_p3, %p1699_p2 }
 0x391   : > { %1707 = shalt.err (!%p1704_p4)
}
 0x392   : > { %1562 = dma.vmem_to_hbm [thread:$0]  (%p1567_p7), %s1242_s23, 16, %s2008_s8, [#allocation6]  }
 0x393   : > { %1713 = dma.done.wait (%p1567_p7), [#allocation4], 32  }
 0x394   : > { %1715 = vsyncadd (%p1567_p7), [#allocation4], 4294967264 }
 0x395   : > { %1717 = dma.done.wait (%p1567_p7), [#allocation6], 16  }
 0x396   : > { %1719 = vsyncadd (%p1567_p7), [#allocation6], 4294967280 }
 0x397 PF: > { %s21_s27 = sadd.s32 1, %s1722_s27  }
 0x398   : > { %p18_p5 = scmp.ge.s32.totalorder %s21_s27, 6  }
 0x39a   :  { %20 = sbr.rel (!%p18_p5) target bundleno = 2 (0x2), region = 97 }
 0x3a1   :  { %1258 = vsyncpa [#allocation4], 1 }
 0x3a2   :  { %1260 = vsyncpa [#allocation4 + $0x1], 1 }
 0x3a3   :  { %1261 = vsyncpa [#allocation6], 1 }

</bundles_post_ra>
